<compile_context>
chip_gen: v7x
topology: tpu7x:2x2x1
jax: 0.10.0
libtpu: 0.0.40
codegen_flags: <defaults>
</compile_context>

<pallas_src>
import functools
import inspect
import math

import jax
import jax.numpy as jnp
from jax import lax
from jax.experimental import pallas as pl
from jax.experimental.pallas import tpu as pltpu


def _supports_pipeline_mode():
    try:
        sig = inspect.signature(pl.BlockSpec)
        return "pipeline_mode" in sig.parameters and hasattr(pl, "Buffered")
    except (TypeError, ValueError):
        return False


_HAS_PIPELINE_MODE = _supports_pipeline_mode()


def _gelu_tanh(x):
    # tanh-approximation GELU (tanh runs on the EUP -> near-free vs VALU poly).
    # TODO(synk): PyTorch nn.GELU() default is exact erf; tanh approx differs by ~1e-3.
    c = 0.7978845608028654  # sqrt(2/pi)
    return 0.5 * x * (1.0 + jnp.tanh(c * (x + 0.044715 * (x * x * x))))


def _layernorm(x, w, b, eps=1e-5):
    mu = jnp.mean(x, axis=-1, keepdims=True)
    xc = x - mu
    var = jnp.mean(xc * xc, axis=-1, keepdims=True)
    return xc * lax.rsqrt(var + eps) * w + b


def _block_kernel(x_ref,
                  wq_ref, bq_ref, wk_ref, bk_ref, wv_ref, bv_ref,
                  wo_ref, bo_ref,
                  ln1_w_ref, ln1_b_ref,
                  w1_ref, b1_ref, w2_ref, b2_ref,
                  ln2_w_ref, ln2_b_ref,
                  o_ref,
                  k_scratch, v_scratch,
                  *, embed_dim, num_heads, q_tile):
    E = embed_dim
    H = num_heads
    Dh = E // H
    Tq = q_tile
    scale = 1.0 / math.sqrt(Dh)
    qt = pl.program_id(1)

    # ---- K / V projections for the whole sequence: once per batch element ----
    @pl.when(qt == 0)
    def _():
        xb = x_ref[0].astype(jnp.bfloat16)                              # (S, E)
        k = jnp.dot(xb, wk_ref[...],
                    preferred_element_type=jnp.float32) + bk_ref[0]
        v = jnp.dot(xb, wv_ref[...],
                    preferred_element_type=jnp.float32) + bv_ref[0]
        k_scratch[...] = k.astype(jnp.bfloat16)
        v_scratch[...] = v.astype(jnp.bfloat16)

    # ---- Q projection for this tile of query rows ----------------------------
    row0 = pl.multiple_of(qt * Tq, Tq)
    x_tile = x_ref[0, pl.ds(row0, Tq), :]                               # (Tq, E) f32
    q_t = (jnp.dot(x_tile.astype(jnp.bfloat16), wq_ref[...],
                   preferred_element_type=jnp.float32) + bq_ref[0])     # (Tq, E) f32
    q_bf = (q_t * scale).astype(jnp.bfloat16)

    # ---- attention: per head, no transpose / no concat -----------------------
    # out-projection is accumulated per head:  attn += head_h @ Wo[hDh:(h+1)Dh, :]
    contract_last = (((1,), (1,)), ((), ()))
    attn_acc = jnp.zeros((Tq, E), jnp.float32)
    for h in range(H):                                                  # static unroll
        sl = slice(h * Dh, (h + 1) * Dh)
        s = lax.dot_general(q_bf[:, sl], k_scratch[:, sl], contract_last,
                            preferred_element_type=jnp.float32)         # (Tq, S)
        s = s - jnp.max(s, axis=-1, keepdims=True)
        p = jnp.exp(s)
        denom = jnp.sum(p, axis=-1, keepdims=True)
        head = jnp.dot(p.astype(jnp.bfloat16), v_scratch[:, sl],
                       preferred_element_type=jnp.float32)              # (Tq, Dh)
        head = head * pl.reciprocal(denom, approx=True)
        attn_acc = attn_acc + jnp.dot(head.astype(jnp.bfloat16), wo_ref[sl, :],
                                      preferred_element_type=jnp.float32)
    attn_out = attn_acc + bo_ref[0]

    # dropout: identity (eval-mode inference kernel)
    x1 = _layernorm(x_tile + attn_out, ln1_w_ref[0], ln1_b_ref[0])      # (Tq, E) f32

    # ---- feed-forward ---------------------------------------------------------
    h1 = (jnp.dot(x1.astype(jnp.bfloat16), w1_ref[...],
                  preferred_element_type=jnp.float32) + b1_ref[0])      # (Tq, 4E)
    h1 = _gelu_tanh(h1)
    ffn = (jnp.dot(h1.astype(jnp.bfloat16), w2_ref[...],
                   preferred_element_type=jnp.float32) + b2_ref[0])     # (Tq, E)

    x2 = _layernorm(x1 + ffn, ln2_w_ref[0], ln2_b_ref[0])
    o_ref[0] = x2.astype(o_ref.dtype)


def ffn_residual_self_attn_block(x, params, *, num_heads, q_tile=None):
    """x: (batch, seq, embed) float32 -> (batch, seq, embed) float32."""
    B, S, E = x.shape
    assert E % num_heads == 0

    # Sequence tile: biggest divisor of S that is a multiple of 8 (<=256),
    # or the full sequence if S is small / ragged.
    if q_tile is None:
        if S <= 256:
            q_tile = S
        else:
            q_tile = next((t for t in (256, 128, 64, 32, 16, 8) if S % t == 0), S)
    assert S % q_tile == 0 and (q_tile == S or q_tile % 8 == 0)
    n_q = S // q_tile

    f32 = jnp.float32
    wdt = jnp.bfloat16  # matmul inputs in bf16; accumulation stays f32

    in_w = params["in_proj_weight"]                  # (3E, E)
    in_b = params["in_proj_bias"]                    # (3E,)
    wq_t = in_w[0 * E:1 * E].T.astype(wdt)           # (E, E)
    wk_t = in_w[1 * E:2 * E].T.astype(wdt)
    wv_t = in_w[2 * E:3 * E].T.astype(wdt)
    bq = in_b[None, 0 * E:1 * E].astype(f32)         # (1, E)
    bk = in_b[None, 1 * E:2 * E].astype(f32)
    bv = in_b[None, 2 * E:3 * E].astype(f32)
    wo_t = params["out_proj_weight"].T.astype(wdt)   # (E, E)
    bo = params["out_proj_bias"][None, :].astype(f32)
    ln1_w = params["ln1_weight"][None, :].astype(f32)
    ln1_b = params["ln1_bias"][None, :].astype(f32)
    w1_t = params["ffn_w1"].T.astype(wdt)            # (E, 4E)
    b1 = params["ffn_b1"][None, :].astype(f32)       # (1, 4E)
    w2_t = params["ffn_w2"].T.astype(wdt)            # (4E, E)
    b2 = params["ffn_b2"][None, :].astype(f32)       # (1, E)
    ln2_w = params["ln2_weight"][None, :].astype(f32)
    ln2_b = params["ln2_bias"][None, :].astype(f32)

    weights = (wq_t, bq, wk_t, bk, wv_t, bv, wo_t, bo,
               ln1_w, ln1_b, w1_t, b1, w2_t, b2, ln2_w, ln2_b)

    def w_spec(arr):
        # Constant index_map across the grid: the block is never re-fetched, so
        # single-buffer it when the installed JAX supports pipeline_mode.
        if _HAS_PIPELINE_MODE:
            return pl.BlockSpec(arr.shape, lambda b, q: (0, 0),
                                pipeline_mode=pl.Buffered(1))
        return pl.BlockSpec(arr.shape, lambda b, q: (0, 0))

    kernel = functools.partial(_block_kernel, embed_dim=E,
                               num_heads=num_heads, q_tile=q_tile)

    return pl.pallas_call(
        kernel,
        out_shape=jax.ShapeDtypeStruct((B, S, E), jnp.float32),
        grid_spec=pltpu.PrefetchScalarGridSpec(
            num_scalar_prefetch=0,
            grid=(B, n_q),
            in_specs=[pl.BlockSpec((1, S, E), lambda b, q: (b, 0, 0))]
                     + [w_spec(w) for w in weights],
            out_specs=pl.BlockSpec((1, q_tile, E), lambda b, q: (b, q, 0)),
            scratch_shapes=[pltpu.VMEM((S, E), jnp.bfloat16),   # K for current batch
                            pltpu.VMEM((S, E), jnp.bfloat16)],  # V for current batch
        ),
        compiler_params=pltpu.CompilerParams(
            dimension_semantics=("parallel", "arbitrary"),
            vmem_limit_bytes=64 * 1024 * 1024),
    )(x.astype(f32), *weights)


def init_params(key, embed_dim, dtype=jnp.float32):
    """Deterministic synthetic parameters matching the module's shapes."""
    E = embed_dim
    ks = jax.random.split(key, 6)
    scale = 0.02
    return {
        "in_proj_weight": scale * jax.random.normal(ks[0], (3 * E, E), dtype),
        "in_proj_bias": jnp.zeros((3 * E,), dtype),
        "out_proj_weight": scale * jax.random.normal(ks[1], (E, E), dtype),
        "out_proj_bias": jnp.zeros((E,), dtype),
        "ln1_weight": jnp.ones((E,), dtype),
        "ln1_bias": jnp.zeros((E,), dtype),
        "ffn_w1": scale * jax.random.normal(ks[2], (4 * E, E), dtype),
        "ffn_b1": scale * jax.random.normal(ks[3], (4 * E,), dtype),
        "ffn_w2": scale * jax.random.normal(ks[4], (E, 4 * E), dtype),
        "ffn_b2": scale * jax.random.normal(ks[5], (E,), dtype),
        "ln2_weight": jnp.ones((E,), dtype),
        "ln2_bias": jnp.zeros((E,), dtype),
    }


def _reference(x, params, num_heads):
    """Pure-JAX f32 reference (exact-erf GELU), for tolerance checking."""
    B, S, E = x.shape
    H = num_heads
    Dh = E // H
    qkv = jnp.einsum('bse,fe->bsf', x, params["in_proj_weight"]) + params["in_proj_bias"]
    q, k, v = qkv[..., :E], qkv[..., E:2 * E], qkv[..., 2 * E:]
    q = q.reshape(B, S, H, Dh).transpose(0, 2, 1, 3) / math.sqrt(Dh)
    k = k.reshape(B, S, H, Dh).transpose(0, 2, 1, 3)
    v = v.reshape(B, S, H, Dh).transpose(0, 2, 1, 3)
    p = jax.nn.softmax(jnp.einsum('bhqd,bhkd->bhqk', q, k), axis=-1)
    o = jnp.einsum('bhqk,bhkd->bhqd', p, v).transpose(0, 2, 1, 3).reshape(B, S, E)
    attn = jnp.einsum('bse,fe->bsf', o, params["out_proj_weight"]) + params["out_proj_bias"]

    def ln(z, w, b):
        mu = z.mean(-1, keepdims=True)
        var = ((z - mu) ** 2).mean(-1, keepdims=True)
        return (z - mu) / jnp.sqrt(var + 1e-5) * w + b

    x1 = ln(x + attn, params["ln1_weight"], params["ln1_bias"])
    h1 = jnp.einsum('bse,fe->bsf', x1, params["ffn_w1"]) + params["ffn_b1"]
    h1 = jax.nn.gelu(h1, approximate=False)
    f = jnp.einsum('bsf,ef->bse', h1, params["ffn_w2"]) + params["ffn_b2"]
    return ln(x1 + f, params["ln2_weight"], params["ln2_bias"])


if __name__ == "__main__":
    B, S, E, H = 2, 8, 32, 4
    key = jax.random.PRNGKey(0)
    k_x, k_p = jax.random.split(key)
    x = jax.random.normal(k_x, (B, S, E), jnp.float32)
    params = init_params(k_p, E)

    out = jax.block_until_ready(ffn_residual_self_attn_block(x, params, num_heads=H))
    assert out.shape == (B, S, E) and out.dtype == jnp.float32
    assert bool(jnp.all(jnp.isfinite(out)))

    ref = _reference(x, params, H)
    err = float(jnp.max(jnp.abs(out - ref)))
    assert err < 5e-2, f"max abs err vs f32 reference: {err}"
    print("KERNEL_OK")
</pallas_src>

<mosaic_0001>
module attributes {stable_mosaic.version = 11 : i64} {
  func.func @_block_kernel(%arg0: i32, %arg1: i32, %arg2: memref<1x8x32xf32, #tpu.memory_space<vmem>>, %arg3: memref<32x32xbf16, #tpu.memory_space<vmem>>, %arg4: memref<1x32xf32, #tpu.memory_space<vmem>>, %arg5: memref<32x32xbf16, #tpu.memory_space<vmem>>, %arg6: memref<1x32xf32, #tpu.memory_space<vmem>>, %arg7: memref<32x32xbf16, #tpu.memory_space<vmem>>, %arg8: memref<1x32xf32, #tpu.memory_space<vmem>>, %arg9: memref<32x32xbf16, #tpu.memory_space<vmem>>, %arg10: memref<1x32xf32, #tpu.memory_space<vmem>>, %arg11: memref<1x32xf32, #tpu.memory_space<vmem>>, %arg12: memref<1x32xf32, #tpu.memory_space<vmem>>, %arg13: memref<32x128xbf16, #tpu.memory_space<vmem>>, %arg14: memref<1x128xf32, #tpu.memory_space<vmem>>, %arg15: memref<128x32xbf16, #tpu.memory_space<vmem>>, %arg16: memref<1x32xf32, #tpu.memory_space<vmem>>, %arg17: memref<1x32xf32, #tpu.memory_space<vmem>>, %arg18: memref<1x32xf32, #tpu.memory_space<vmem>>, %arg19: memref<1x8x32xf32, #tpu.memory_space<vmem>>, %arg20: memref<8x32xbf16, #tpu.memory_space<vmem>>, %arg21: memref<8x32xbf16, #tpu.memory_space<vmem>>) attributes {dimension_semantics = [#tpu.dimension_semantics<parallel>, #tpu.dimension_semantics<arbitrary>], iteration_bounds = array<i64: 2, 1>, scalar_prefetch = 0 : i64, scratch_operands = 2 : i64, tpu.core_type = #tpu.core_type<tc>, window_params = [{transform_indices = @transform_0, window_bounds = array<i64: 1, 8, 32>}, {pipeline_mode = #tpu.pipeline_mode<synchronous>, transform_indices = @transform_1, window_bounds = array<i64: 32, 32>}, {pipeline_mode = #tpu.pipeline_mode<synchronous>, transform_indices = @transform_2, window_bounds = array<i64: 1, 32>}, {pipeline_mode = #tpu.pipeline_mode<synchronous>, transform_indices = @transform_3, window_bounds = array<i64: 32, 32>}, {pipeline_mode = #tpu.pipeline_mode<synchronous>, transform_indices = @transform_4, window_bounds = array<i64: 1, 32>}, {pipeline_mode = #tpu.pipeline_mode<synchronous>, transform_indices = @transform_5, window_bounds = array<i64: 32, 32>}, {pipeline_mode = #tpu.pipeline_mode<synchronous>, transform_indices = @transform_6, window_bounds = array<i64: 1, 32>}, {pipeline_mode = #tpu.pipeline_mode<synchronous>, transform_indices = @transform_7, window_bounds = array<i64: 32, 32>}, {pipeline_mode = #tpu.pipeline_mode<synchronous>, transform_indices = @transform_8, window_bounds = array<i64: 1, 32>}, {pipeline_mode = #tpu.pipeline_mode<synchronous>, transform_indices = @transform_9, window_bounds = array<i64: 1, 32>}, {pipeline_mode = #tpu.pipeline_mode<synchronous>, transform_indices = @transform_10, window_bounds = array<i64: 1, 32>}, {pipeline_mode = #tpu.pipeline_mode<synchronous>, transform_indices = @transform_11, window_bounds = array<i64: 32, 128>}, {pipeline_mode = #tpu.pipeline_mode<synchronous>, transform_indices = @transform_12, window_bounds = array<i64: 1, 128>}, {pipeline_mode = #tpu.pipeline_mode<synchronous>, transform_indices = @transform_13, window_bounds = array<i64: 128, 32>}, {pipeline_mode = #tpu.pipeline_mode<synchronous>, transform_indices = @transform_14, window_bounds = array<i64: 1, 32>}, {pipeline_mode = #tpu.pipeline_mode<synchronous>, transform_indices = @transform_15, window_bounds = array<i64: 1, 32>}, {pipeline_mode = #tpu.pipeline_mode<synchronous>, transform_indices = @transform_16, window_bounds = array<i64: 1, 32>}, {transform_indices = @transform_17, window_bounds = array<i64: 1, 8, 32>}]} {
    %c0_i32 = arith.constant 0 : i32
    %0 = arith.cmpi eq, %arg1, %c0_i32 : i32
    %1 = arith.extui %0 : i1 to i32
    %c0_i32_0 = arith.constant 0 : i32
    %2 = arith.cmpi ne, %1, %c0_i32_0 : i32
    scf.if %2 {
      %c0_86 = arith.constant 0 : index
      %c0_87 = arith.constant 0 : index
      %c0_88 = arith.constant 0 : index
      %191 = vector.load %arg2[%c0_86, %c0_87, %c0_88] : memref<1x8x32xf32, #tpu.memory_space<vmem>>, vector<1x8x32xf32>
      %192 = vector.shape_cast %191 : vector<1x8x32xf32> to vector<8x32xf32>
      %193 = arith.truncf %192 : vector<8x32xf32> to vector<8x32xbf16>
      %c0_89 = arith.constant 0 : index
      %c0_90 = arith.constant 0 : index
      %194 = vector.load %arg5[%c0_89, %c0_90] : memref<32x32xbf16, #tpu.memory_space<vmem>>, vector<32x32xbf16>
      %cst_91 = arith.constant dense<0.000000e+00> : vector<8x32xf32>
      %195 = tpu.matmul %193, %194, %cst_91 {dimension_numbers = #tpu.dot_dimension_numbers<[1], [0], [0], [1], [0, 0, 1, 1], [], []>} : vector<8x32xbf16>, vector<32x32xbf16>, vector<8x32xf32> -> vector<8x32xf32>
      %c0_92 = arith.constant 0 : index
      %c0_93 = arith.constant 0 : index
      %196 = vector.load %arg6[%c0_92, %c0_93] : memref<1x32xf32, #tpu.memory_space<vmem>>, vector<1x32xf32>
      %197 = vector.shape_cast %196 : vector<1x32xf32> to vector<32xf32>
      %198 = vector.shape_cast %197 : vector<32xf32> to vector<1x32xf32>
      %199 = vector.broadcast %198 : vector<1x32xf32> to vector<8x32xf32>
      %200 = arith.addf %195, %199 : vector<8x32xf32>
      %c0_94 = arith.constant 0 : index
      %c0_95 = arith.constant 0 : index
      %201 = vector.load %arg7[%c0_94, %c0_95] : memref<32x32xbf16, #tpu.memory_space<vmem>>, vector<32x32xbf16>
      %cst_96 = arith.constant dense<0.000000e+00> : vector<8x32xf32>
      %202 = tpu.matmul %193, %201, %cst_96 {dimension_numbers = #tpu.dot_dimension_numbers<[1], [0], [0], [1], [0, 0, 1, 1], [], []>} : vector<8x32xbf16>, vector<32x32xbf16>, vector<8x32xf32> -> vector<8x32xf32>
      %c0_97 = arith.constant 0 : index
      %c0_98 = arith.constant 0 : index
      %203 = vector.load %arg8[%c0_97, %c0_98] : memref<1x32xf32, #tpu.memory_space<vmem>>, vector<1x32xf32>
      %204 = vector.shape_cast %203 : vector<1x32xf32> to vector<32xf32>
      %205 = vector.shape_cast %204 : vector<32xf32> to vector<1x32xf32>
      %206 = vector.broadcast %205 : vector<1x32xf32> to vector<8x32xf32>
      %207 = arith.addf %202, %206 : vector<8x32xf32>
      %208 = arith.truncf %200 : vector<8x32xf32> to vector<8x32xbf16>
      %c0_99 = arith.constant 0 : index
      %c0_100 = arith.constant 0 : index
      %209 = vector.load %arg20[%c0_99, %c0_100] : memref<8x32xbf16, #tpu.memory_space<vmem>>, vector<8x32xbf16>
      tpu.vector_store %arg20[%c0_99, %c0_100], %208 {strides = array<i32>} : memref<8x32xbf16, #tpu.memory_space<vmem>>, vector<8x32xbf16>,
      %210 = arith.truncf %207 : vector<8x32xf32> to vector<8x32xbf16>
      %c0_101 = arith.constant 0 : index
      %c0_102 = arith.constant 0 : index
      %211 = vector.load %arg21[%c0_101, %c0_102] : memref<8x32xbf16, #tpu.memory_space<vmem>>, vector<8x32xbf16>
      tpu.vector_store %arg21[%c0_101, %c0_102], %210 {strides = array<i32>} : memref<8x32xbf16, #tpu.memory_space<vmem>>, vector<8x32xbf16>,
    } else {
    }
    %c8_i32 = arith.constant 8 : i32
    %3 = arith.muli %arg1, %c8_i32 : i32
    %4 = tpu.assume_multiple %3, 8 : i32
    %c0 = arith.constant 0 : index
    %5 = arith.index_cast %4 : i32 to index
    %c0_1 = arith.constant 0 : index
    %6 = vector.load %arg2[%c0, %5, %c0_1] : memref<1x8x32xf32, #tpu.memory_space<vmem>>, vector<1x8x32xf32>
    %7 = vector.shape_cast %6 : vector<1x8x32xf32> to vector<8x32xf32>
    %8 = arith.truncf %7 : vector<8x32xf32> to vector<8x32xbf16>
    %c0_2 = arith.constant 0 : index
    %c0_3 = arith.constant 0 : index
    %9 = vector.load %arg3[%c0_2, %c0_3] : memref<32x32xbf16, #tpu.memory_space<vmem>>, vector<32x32xbf16>
    %cst = arith.constant dense<0.000000e+00> : vector<8x32xf32>
    %10 = tpu.matmul %8, %9, %cst {dimension_numbers = #tpu.dot_dimension_numbers<[1], [0], [0], [1], [0, 0, 1, 1], [], []>} : vector<8x32xbf16>, vector<32x32xbf16>, vector<8x32xf32> -> vector<8x32xf32>
    %c0_4 = arith.constant 0 : index
    %c0_5 = arith.constant 0 : index
    %11 = vector.load %arg4[%c0_4, %c0_5] : memref<1x32xf32, #tpu.memory_space<vmem>>, vector<1x32xf32>
    %12 = vector.shape_cast %11 : vector<1x32xf32> to vector<32xf32>
    %13 = vector.shape_cast %12 : vector<32xf32> to vector<1x32xf32>
    %14 = vector.broadcast %13 : vector<1x32xf32> to vector<8x32xf32>
    %15 = arith.addf %10, %14 : vector<8x32xf32>
    %cst_6 = arith.constant 0.353553385 : f32
    %16 = vector.broadcast %cst_6 : f32 to vector<8x32xf32>
    %17 = arith.mulf %15, %16 : vector<8x32xf32>
    %18 = arith.truncf %17 : vector<8x32xf32> to vector<8x32xbf16>
    %cst_7 = arith.constant 0.000000e+00 : f32
    %19 = vector.broadcast %cst_7 : f32 to vector<8x32xf32>
    %20 = vector.extract_strided_slice %18 {offsets = [0, 0], sizes = [8, 8], strides = [1, 1]} : vector<8x32xbf16> to vector<8x8xbf16>
    %c0_8 = arith.constant 0 : index
    %c0_9 = arith.constant 0 : index
    %21 = vector.load %arg20[%c0_8, %c0_9] : memref<8x32xbf16, #tpu.memory_space<vmem>>, vector<8x8xbf16>
    %cst_10 = arith.constant dense<0.000000e+00> : vector<8x8xf32>
    %22 = tpu.matmul %20, %21, %cst_10 {dimension_numbers = #tpu.dot_dimension_numbers<[1], [1], [0], [0], [0, 0, 1, 0], [], []>} : vector<8x8xbf16>, vector<8x8xbf16>, vector<8x8xf32> -> vector<8x8xf32>
    %cst_11 = arith.constant dense<0xFF800000> : vector<8xf32>
    %23 = vector.multi_reduction <maximumf>, %22, %cst_11 [1] : vector<8x8xf32> to vector<8xf32>
    %24 = vector.shape_cast %23 : vector<8xf32> to vector<8x1xf32>
    %25 = vector.broadcast %24 : vector<8x1xf32> to vector<8x8xf32>
    %26 = arith.subf %22, %25 : vector<8x8xf32>
    %27 = math.exp %26 : vector<8x8xf32>
    %cst_12 = arith.constant dense<0.000000e+00> : vector<8xf32>
    %28 = vector.multi_reduction <add>, %27, %cst_12 [1] : vector<8x8xf32> to vector<8xf32>
    %29 = vector.shape_cast %28 : vector<8xf32> to vector<8x1xf32>
    %30 = arith.truncf %27 : vector<8x8xf32> to vector<8x8xbf16>
    %c0_13 = arith.constant 0 : index
    %c0_14 = arith.constant 0 : index
    %31 = vector.load %arg21[%c0_13, %c0_14] : memref<8x32xbf16, #tpu.memory_space<vmem>>, vector<8x8xbf16>
    %cst_15 = arith.constant dense<0.000000e+00> : vector<8x8xf32>
    %32 = tpu.matmul %30, %31, %cst_15 {dimension_numbers = #tpu.dot_dimension_numbers<[1], [0], [0], [1], [0, 0, 1, 1], [], []>} : vector<8x8xbf16>, vector<8x8xbf16>, vector<8x8xf32> -> vector<8x8xf32>
    %33 = tpu.reciprocal %29 {approx = true} : vector<8x1xf32> -> vector<8x1xf32>
    %34 = vector.broadcast %33 : vector<8x1xf32> to vector<8x8xf32>
    %35 = arith.mulf %32, %34 : vector<8x8xf32>
    %36 = arith.truncf %35 : vector<8x8xf32> to vector<8x8xbf16>
    %c0_16 = arith.constant 0 : index
    %c0_17 = arith.constant 0 : index
    %37 = vector.load %arg9[%c0_16, %c0_17] : memref<32x32xbf16, #tpu.memory_space<vmem>>, vector<8x32xbf16>
    %cst_18 = arith.constant dense<0.000000e+00> : vector<8x32xf32>
    %38 = tpu.matmul %36, %37, %cst_18 {dimension_numbers = #tpu.dot_dimension_numbers<[1], [0], [0], [1], [0, 0, 1, 1], [], []>} : vector<8x8xbf16>, vector<8x32xbf16>, vector<8x32xf32> -> vector<8x32xf32>
    %39 = arith.addf %19, %38 : vector<8x32xf32>
    %40 = vector.extract_strided_slice %18 {offsets = [0, 8], sizes = [8, 8], strides = [1, 1]} : vector<8x32xbf16> to vector<8x8xbf16>
    %c0_19 = arith.constant 0 : index
    %c8 = arith.constant 8 : index
    %41 = vector.load %arg20[%c0_19, %c8] : memref<8x32xbf16, #tpu.memory_space<vmem>>, vector<8x8xbf16>
    %cst_20 = arith.constant dense<0.000000e+00> : vector<8x8xf32>
    %42 = tpu.matmul %40, %41, %cst_20 {dimension_numbers = #tpu.dot_dimension_numbers<[1], [1], [0], [0], [0, 0, 1, 0], [], []>} : vector<8x8xbf16>, vector<8x8xbf16>, vector<8x8xf32> -> vector<8x8xf32>
    %cst_21 = arith.constant dense<0xFF800000> : vector<8xf32>
    %43 = vector.multi_reduction <maximumf>, %42, %cst_21 [1] : vector<8x8xf32> to vector<8xf32>
    %44 = vector.shape_cast %43 : vector<8xf32> to vector<8x1xf32>
    %45 = vector.broadcast %44 : vector<8x1xf32> to vector<8x8xf32>
    %46 = arith.subf %42, %45 : vector<8x8xf32>
    %47 = math.exp %46 : vector<8x8xf32>
    %cst_22 = arith.constant dense<0.000000e+00> : vector<8xf32>
    %48 = vector.multi_reduction <add>, %47, %cst_22 [1] : vector<8x8xf32> to vector<8xf32>
    %49 = vector.shape_cast %48 : vector<8xf32> to vector<8x1xf32>
    %50 = arith.truncf %47 : vector<8x8xf32> to vector<8x8xbf16>
    %c0_23 = arith.constant 0 : index
    %c8_24 = arith.constant 8 : index
    %51 = vector.load %arg21[%c0_23, %c8_24] : memref<8x32xbf16, #tpu.memory_space<vmem>>, vector<8x8xbf16>
    %cst_25 = arith.constant dense<0.000000e+00> : vector<8x8xf32>
    %52 = tpu.matmul %50, %51, %cst_25 {dimension_numbers = #tpu.dot_dimension_numbers<[1], [0], [0], [1], [0, 0, 1, 1], [], []>} : vector<8x8xbf16>, vector<8x8xbf16>, vector<8x8xf32> -> vector<8x8xf32>
    %53 = tpu.reciprocal %49 {approx = true} : vector<8x1xf32> -> vector<8x1xf32>
    %54 = vector.broadcast %53 : vector<8x1xf32> to vector<8x8xf32>
    %55 = arith.mulf %52, %54 : vector<8x8xf32>
    %56 = arith.truncf %55 : vector<8x8xf32> to vector<8x8xbf16>
    %c8_26 = arith.constant 8 : index
    %c0_27 = arith.constant 0 : index
    %57 = vector.load %arg9[%c8_26, %c0_27] : memref<32x32xbf16, #tpu.memory_space<vmem>>, vector<8x32xbf16>
    %cst_28 = arith.constant dense<0.000000e+00> : vector<8x32xf32>
    %58 = tpu.matmul %56, %57, %cst_28 {dimension_numbers = #tpu.dot_dimension_numbers<[1], [0], [0], [1], [0, 0, 1, 1], [], []>} : vector<8x8xbf16>, vector<8x32xbf16>, vector<8x32xf32> -> vector<8x32xf32>
    %59 = arith.addf %39, %58 : vector<8x32xf32>
    %60 = vector.extract_strided_slice %18 {offsets = [0, 16], sizes = [8, 8], strides = [1, 1]} : vector<8x32xbf16> to vector<8x8xbf16>
    %c0_29 = arith.constant 0 : index
    %c16 = arith.constant 16 : index
    %61 = vector.load %arg20[%c0_29, %c16] : memref<8x32xbf16, #tpu.memory_space<vmem>>, vector<8x8xbf16>
    %cst_30 = arith.constant dense<0.000000e+00> : vector<8x8xf32>
    %62 = tpu.matmul %60, %61, %cst_30 {dimension_numbers = #tpu.dot_dimension_numbers<[1], [1], [0], [0], [0, 0, 1, 0], [], []>} : vector<8x8xbf16>, vector<8x8xbf16>, vector<8x8xf32> -> vector<8x8xf32>
    %cst_31 = arith.constant dense<0xFF800000> : vector<8xf32>
    %63 = vector.multi_reduction <maximumf>, %62, %cst_31 [1] : vector<8x8xf32> to vector<8xf32>
    %64 = vector.shape_cast %63 : vector<8xf32> to vector<8x1xf32>
    %65 = vector.broadcast %64 : vector<8x1xf32> to vector<8x8xf32>
    %66 = arith.subf %62, %65 : vector<8x8xf32>
    %67 = math.exp %66 : vector<8x8xf32>
    %cst_32 = arith.constant dense<0.000000e+00> : vector<8xf32>
    %68 = vector.multi_reduction <add>, %67, %cst_32 [1] : vector<8x8xf32> to vector<8xf32>
    %69 = vector.shape_cast %68 : vector<8xf32> to vector<8x1xf32>
    %70 = arith.truncf %67 : vector<8x8xf32> to vector<8x8xbf16>
    %c0_33 = arith.constant 0 : index
    %c16_34 = arith.constant 16 : index
    %71 = vector.load %arg21[%c0_33, %c16_34] : memref<8x32xbf16, #tpu.memory_space<vmem>>, vector<8x8xbf16>
    %cst_35 = arith.constant dense<0.000000e+00> : vector<8x8xf32>
    %72 = tpu.matmul %70, %71, %cst_35 {dimension_numbers = #tpu.dot_dimension_numbers<[1], [0], [0], [1], [0, 0, 1, 1], [], []>} : vector<8x8xbf16>, vector<8x8xbf16>, vector<8x8xf32> -> vector<8x8xf32>
    %73 = tpu.reciprocal %69 {approx = true} : vector<8x1xf32> -> vector<8x1xf32>
    %74 = vector.broadcast %73 : vector<8x1xf32> to vector<8x8xf32>
    %75 = arith.mulf %72, %74 : vector<8x8xf32>
    %76 = arith.truncf %75 : vector<8x8xf32> to vector<8x8xbf16>
    %c16_36 = arith.constant 16 : index
    %c0_37 = arith.constant 0 : index
    %77 = vector.load %arg9[%c16_36, %c0_37] : memref<32x32xbf16, #tpu.memory_space<vmem>>, vector<8x32xbf16>
    %cst_38 = arith.constant dense<0.000000e+00> : vector<8x32xf32>
    %78 = tpu.matmul %76, %77, %cst_38 {dimension_numbers = #tpu.dot_dimension_numbers<[1], [0], [0], [1], [0, 0, 1, 1], [], []>} : vector<8x8xbf16>, vector<8x32xbf16>, vector<8x32xf32> -> vector<8x32xf32>
    %79 = arith.addf %59, %78 : vector<8x32xf32>
    %80 = vector.extract_strided_slice %18 {offsets = [0, 24], sizes = [8, 8], strides = [1, 1]} : vector<8x32xbf16> to vector<8x8xbf16>
    %c0_39 = arith.constant 0 : index
    %c24 = arith.constant 24 : index
    %81 = vector.load %arg20[%c0_39, %c24] : memref<8x32xbf16, #tpu.memory_space<vmem>>, vector<8x8xbf16>
    %cst_40 = arith.constant dense<0.000000e+00> : vector<8x8xf32>
    %82 = tpu.matmul %80, %81, %cst_40 {dimension_numbers = #tpu.dot_dimension_numbers<[1], [1], [0], [0], [0, 0, 1, 0], [], []>} : vector<8x8xbf16>, vector<8x8xbf16>, vector<8x8xf32> -> vector<8x8xf32>
    %cst_41 = arith.constant dense<0xFF800000> : vector<8xf32>
    %83 = vector.multi_reduction <maximumf>, %82, %cst_41 [1] : vector<8x8xf32> to vector<8xf32>
    %84 = vector.shape_cast %83 : vector<8xf32> to vector<8x1xf32>
    %85 = vector.broadcast %84 : vector<8x1xf32> to vector<8x8xf32>
    %86 = arith.subf %82, %85 : vector<8x8xf32>
    %87 = math.exp %86 : vector<8x8xf32>
    %cst_42 = arith.constant dense<0.000000e+00> : vector<8xf32>
    %88 = vector.multi_reduction <add>, %87, %cst_42 [1] : vector<8x8xf32> to vector<8xf32>
    %89 = vector.shape_cast %88 : vector<8xf32> to vector<8x1xf32>
    %90 = arith.truncf %87 : vector<8x8xf32> to vector<8x8xbf16>
    %c0_43 = arith.constant 0 : index
    %c24_44 = arith.constant 24 : index
    %91 = vector.load %arg21[%c0_43, %c24_44] : memref<8x32xbf16, #tpu.memory_space<vmem>>, vector<8x8xbf16>
    %cst_45 = arith.constant dense<0.000000e+00> : vector<8x8xf32>
    %92 = tpu.matmul %90, %91, %cst_45 {dimension_numbers = #tpu.dot_dimension_numbers<[1], [0], [0], [1], [0, 0, 1, 1], [], []>} : vector<8x8xbf16>, vector<8x8xbf16>, vector<8x8xf32> -> vector<8x8xf32>
    %93 = tpu.reciprocal %89 {approx = true} : vector<8x1xf32> -> vector<8x1xf32>
    %94 = vector.broadcast %93 : vector<8x1xf32> to vector<8x8xf32>
    %95 = arith.mulf %92, %94 : vector<8x8xf32>
    %96 = arith.truncf %95 : vector<8x8xf32> to vector<8x8xbf16>
    %c24_46 = arith.constant 24 : index
    %c0_47 = arith.constant 0 : index
    %97 = vector.load %arg9[%c24_46, %c0_47] : memref<32x32xbf16, #tpu.memory_space<vmem>>, vector<8x32xbf16>
    %cst_48 = arith.constant dense<0.000000e+00> : vector<8x32xf32>
    %98 = tpu.matmul %96, %97, %cst_48 {dimension_numbers = #tpu.dot_dimension_numbers<[1], [0], [0], [1], [0, 0, 1, 1], [], []>} : vector<8x8xbf16>, vector<8x32xbf16>, vector<8x32xf32> -> vector<8x32xf32>
    %99 = arith.addf %79, %98 : vector<8x32xf32>
    %c0_49 = arith.constant 0 : index
    %c0_50 = arith.constant 0 : index
    %100 = vector.load %arg10[%c0_49, %c0_50] : memref<1x32xf32, #tpu.memory_space<vmem>>, vector<1x32xf32>
    %101 = vector.shape_cast %100 : vector<1x32xf32> to vector<32xf32>
    %102 = vector.shape_cast %101 : vector<32xf32> to vector<1x32xf32>
    %103 = vector.broadcast %102 : vector<1x32xf32> to vector<8x32xf32>
    %104 = arith.addf %99, %103 : vector<8x32xf32>
    %105 = arith.addf %7, %104 : vector<8x32xf32>
    %c0_51 = arith.constant 0 : index
    %c0_52 = arith.constant 0 : index
    %106 = vector.load %arg11[%c0_51, %c0_52] : memref<1x32xf32, #tpu.memory_space<vmem>>, vector<1x32xf32>
    %107 = vector.shape_cast %106 : vector<1x32xf32> to vector<32xf32>
    %c0_53 = arith.constant 0 : index
    %c0_54 = arith.constant 0 : index
    %108 = vector.load %arg12[%c0_53, %c0_54] : memref<1x32xf32, #tpu.memory_space<vmem>>, vector<1x32xf32>
    %109 = vector.shape_cast %108 : vector<1x32xf32> to vector<32xf32>
    %cst_55 = arith.constant dense<0.000000e+00> : vector<8xf32>
    %110 = vector.multi_reduction <add>, %105, %cst_55 [1] : vector<8x32xf32> to vector<8xf32>
    %111 = vector.shape_cast %110 : vector<8xf32> to vector<8x1xf32>
    %cst_56 = arith.constant 3.200000e+01 : f32
    %112 = vector.broadcast %cst_56 : f32 to vector<8x1xf32>
    %113 = arith.divf %111, %112 : vector<8x1xf32>
    %114 = vector.broadcast %113 : vector<8x1xf32> to vector<8x32xf32>
    %115 = arith.subf %105, %114 : vector<8x32xf32>
    %116 = arith.mulf %115, %115 : vector<8x32xf32>
    %cst_57 = arith.constant dense<0.000000e+00> : vector<8xf32>
    %117 = vector.multi_reduction <add>, %116, %cst_57 [1] : vector<8x32xf32> to vector<8xf32>
    %118 = vector.shape_cast %117 : vector<8xf32> to vector<8x1xf32>
    %cst_58 = arith.constant 3.200000e+01 : f32
    %119 = vector.broadcast %cst_58 : f32 to vector<8x1xf32>
    %120 = arith.divf %118, %119 : vector<8x1xf32>
    %cst_59 = arith.constant 9.99999974E-6 : f32
    %121 = vector.broadcast %cst_59 : f32 to vector<8x1xf32>
    %122 = arith.addf %120, %121 : vector<8x1xf32>
    %123 = math.rsqrt %122 : vector<8x1xf32>
    %124 = vector.broadcast %123 : vector<8x1xf32> to vector<8x32xf32>
    %125 = arith.mulf %115, %124 : vector<8x32xf32>
    %126 = vector.shape_cast %107 : vector<32xf32> to vector<1x32xf32>
    %127 = vector.broadcast %126 : vector<1x32xf32> to vector<8x32xf32>
    %128 = arith.mulf %125, %127 : vector<8x32xf32>
    %129 = vector.shape_cast %109 : vector<32xf32> to vector<1x32xf32>
    %130 = vector.broadcast %129 : vector<1x32xf32> to vector<8x32xf32>
    %131 = arith.addf %128, %130 : vector<8x32xf32>
    %132 = arith.truncf %131 : vector<8x32xf32> to vector<8x32xbf16>
    %c0_60 = arith.constant 0 : index
    %c0_61 = arith.constant 0 : index
    %133 = vector.load %arg13[%c0_60, %c0_61] : memref<32x128xbf16, #tpu.memory_space<vmem>>, vector<32x128xbf16>
    %cst_62 = arith.constant dense<0.000000e+00> : vector<8x128xf32>
    %134 = tpu.matmul %132, %133, %cst_62 {dimension_numbers = #tpu.dot_dimension_numbers<[1], [0], [0], [1], [0, 0, 1, 1], [], []>} : vector<8x32xbf16>, vector<32x128xbf16>, vector<8x128xf32> -> vector<8x128xf32>
    %c0_63 = arith.constant 0 : index
    %c0_64 = arith.constant 0 : index
    %135 = vector.load %arg14[%c0_63, %c0_64] : memref<1x128xf32, #tpu.memory_space<vmem>>, vector<1x128xf32>
    %136 = vector.shape_cast %135 : vector<1x128xf32> to vector<128xf32>
    %137 = vector.shape_cast %136 : vector<128xf32> to vector<1x128xf32>
    %138 = vector.broadcast %137 : vector<1x128xf32> to vector<8x128xf32>
    %139 = arith.addf %134, %138 : vector<8x128xf32>
    %cst_65 = arith.constant 5.000000e-01 : f32
    %140 = vector.broadcast %cst_65 : f32 to vector<8x128xf32>
    %141 = arith.mulf %140, %139 : vector<8x128xf32>
    %142 = arith.mulf %139, %139 : vector<8x128xf32>
    %143 = arith.mulf %142, %139 : vector<8x128xf32>
    %cst_66 = arith.constant 4.471500e-02 : f32
    %144 = vector.broadcast %cst_66 : f32 to vector<8x128xf32>
    %145 = arith.mulf %144, %143 : vector<8x128xf32>
    %146 = arith.addf %139, %145 : vector<8x128xf32>
    %cst_67 = arith.constant 0.797884583 : f32
    %147 = vector.broadcast %cst_67 : f32 to vector<8x128xf32>
    %148 = arith.mulf %147, %146 : vector<8x128xf32>
    %149 = math.tanh %148 : vector<8x128xf32>
    %cst_68 = arith.constant 1.000000e+00 : f32
    %150 = vector.broadcast %cst_68 : f32 to vector<8x128xf32>
    %151 = arith.addf %150, %149 : vector<8x128xf32>
    %152 = arith.mulf %141, %151 : vector<8x128xf32>
    %153 = arith.truncf %152 : vector<8x128xf32> to vector<8x128xbf16>
    %c0_69 = arith.constant 0 : index
    %c0_70 = arith.constant 0 : index
    %154 = vector.load %arg15[%c0_69, %c0_70] : memref<128x32xbf16, #tpu.memory_space<vmem>>, vector<128x32xbf16>
    %cst_71 = arith.constant dense<0.000000e+00> : vector<8x32xf32>
    %155 = tpu.matmul %153, %154, %cst_71 {dimension_numbers = #tpu.dot_dimension_numbers<[1], [0], [0], [1], [0, 0, 1, 1], [], []>} : vector<8x128xbf16>, vector<128x32xbf16>, vector<8x32xf32> -> vector<8x32xf32>
    %c0_72 = arith.constant 0 : index
    %c0_73 = arith.constant 0 : index
    %156 = vector.load %arg16[%c0_72, %c0_73] : memref<1x32xf32, #tpu.memory_space<vmem>>, vector<1x32xf32>
    %157 = vector.shape_cast %156 : vector<1x32xf32> to vector<32xf32>
    %158 = vector.shape_cast %157 : vector<32xf32> to vector<1x32xf32>
    %159 = vector.broadcast %158 : vector<1x32xf32> to vector<8x32xf32>
    %160 = arith.addf %155, %159 : vector<8x32xf32>
    %161 = arith.addf %131, %160 : vector<8x32xf32>
    %c0_74 = arith.constant 0 : index
    %c0_75 = arith.constant 0 : index
    %162 = vector.load %arg17[%c0_74, %c0_75] : memref<1x32xf32, #tpu.memory_space<vmem>>, vector<1x32xf32>
    %163 = vector.shape_cast %162 : vector<1x32xf32> to vector<32xf32>
    %c0_76 = arith.constant 0 : index
    %c0_77 = arith.constant 0 : index
    %164 = vector.load %arg18[%c0_76, %c0_77] : memref<1x32xf32, #tpu.memory_space<vmem>>, vector<1x32xf32>
    %165 = vector.shape_cast %164 : vector<1x32xf32> to vector<32xf32>
    %cst_78 = arith.constant dense<0.000000e+00> : vector<8xf32>
    %166 = vector.multi_reduction <add>, %161, %cst_78 [1] : vector<8x32xf32> to vector<8xf32>
    %167 = vector.shape_cast %166 : vector<8xf32> to vector<8x1xf32>
    %cst_79 = arith.constant 3.200000e+01 : f32
    %168 = vector.broadcast %cst_79 : f32 to vector<8x1xf32>
    %169 = arith.divf %167, %168 : vector<8x1xf32>
    %170 = vector.broadcast %169 : vector<8x1xf32> to vector<8x32xf32>
    %171 = arith.subf %161, %170 : vector<8x32xf32>
    %172 = arith.mulf %171, %171 : vector<8x32xf32>
    %cst_80 = arith.constant dense<0.000000e+00> : vector<8xf32>
    %173 = vector.multi_reduction <add>, %172, %cst_80 [1] : vector<8x32xf32> to vector<8xf32>
    %174 = vector.shape_cast %173 : vector<8xf32> to vector<8x1xf32>
    %cst_81 = arith.constant 3.200000e+01 : f32
    %175 = vector.broadcast %cst_81 : f32 to vector<8x1xf32>
    %176 = arith.divf %174, %175 : vector<8x1xf32>
    %cst_82 = arith.constant 9.99999974E-6 : f32
    %177 = vector.broadcast %cst_82 : f32 to vector<8x1xf32>
    %178 = arith.addf %176, %177 : vector<8x1xf32>
    %179 = math.rsqrt %178 : vector<8x1xf32>
    %180 = vector.broadcast %179 : vector<8x1xf32> to vector<8x32xf32>
    %181 = arith.mulf %171, %180 : vector<8x32xf32>
    %182 = vector.shape_cast %163 : vector<32xf32> to vector<1x32xf32>
    %183 = vector.broadcast %182 : vector<1x32xf32> to vector<8x32xf32>
    %184 = arith.mulf %181, %183 : vector<8x32xf32>
    %185 = vector.shape_cast %165 : vector<32xf32> to vector<1x32xf32>
    %186 = vector.broadcast %185 : vector<1x32xf32> to vector<8x32xf32>
    %187 = arith.addf %184, %186 : vector<8x32xf32>
    %c0_83 = arith.constant 0 : index
    %c0_84 = arith.constant 0 : index
    %c0_85 = arith.constant 0 : index
    %188 = vector.load %arg19[%c0_83, %c0_84, %c0_85] : memref<1x8x32xf32, #tpu.memory_space<vmem>>, vector<1x8x32xf32>
    %189 = vector.shape_cast %188 : vector<1x8x32xf32> to vector<8x32xf32>
    %190 = vector.shape_cast %187 : vector<8x32xf32> to vector<1x8x32xf32>
    tpu.vector_store %arg19[%c0_83, %c0_84, %c0_85], %190 {strides = array<i32>} : memref<1x8x32xf32, #tpu.memory_space<vmem>>, vector<1x8x32xf32>,
    return
  }
  func.func @transform_0(%arg0: i32, %arg1: i32) -> (i32, i32, i32) {
    %c0_i32 = arith.constant 0 : i32
    %c0_i32_0 = arith.constant 0 : i32
    %c0_i32_1 = arith.constant 0 : i32
    return %arg0, %c0_i32, %c0_i32_0 : i32, i32, i32
  }
  func.func @transform_1(%arg0: i32, %arg1: i32) -> (i32, i32) {
    %c0_i32 = arith.constant 0 : i32
    %c0_i32_0 = arith.constant 0 : i32
    %c0_i32_1 = arith.constant 0 : i32
    return %c0_i32, %c0_i32_0 : i32, i32
  }
  func.func @transform_2(%arg0: i32, %arg1: i32) -> (i32, i32) {
    %c0_i32 = arith.constant 0 : i32
    %c0_i32_0 = arith.constant 0 : i32
    %c0_i32_1 = arith.constant 0 : i32
    return %c0_i32, %c0_i32_0 : i32, i32
  }
  func.func @transform_3(%arg0: i32, %arg1: i32) -> (i32, i32) {
    %c0_i32 = arith.constant 0 : i32
    %c0_i32_0 = arith.constant 0 : i32
    %c0_i32_1 = arith.constant 0 : i32
    return %c0_i32, %c0_i32_0 : i32, i32
  }
  func.func @transform_4(%arg0: i32, %arg1: i32) -> (i32, i32) {
    %c0_i32 = arith.constant 0 : i32
    %c0_i32_0 = arith.constant 0 : i32
    %c0_i32_1 = arith.constant 0 : i32
    return %c0_i32, %c0_i32_0 : i32, i32
  }
  func.func @transform_5(%arg0: i32, %arg1: i32) -> (i32, i32) {
    %c0_i32 = arith.constant 0 : i32
    %c0_i32_0 = arith.constant 0 : i32
    %c0_i32_1 = arith.constant 0 : i32
    return %c0_i32, %c0_i32_0 : i32, i32
  }
  func.func @transform_6(%arg0: i32, %arg1: i32) -> (i32, i32) {
    %c0_i32 = arith.constant 0 : i32
    %c0_i32_0 = arith.constant 0 : i32
    %c0_i32_1 = arith.constant 0 : i32
    return %c0_i32, %c0_i32_0 : i32, i32
  }
  func.func @transform_7(%arg0: i32, %arg1: i32) -> (i32, i32) {
    %c0_i32 = arith.constant 0 : i32
    %c0_i32_0 = arith.constant 0 : i32
    %c0_i32_1 = arith.constant 0 : i32
    return %c0_i32, %c0_i32_0 : i32, i32
  }
  func.func @transform_8(%arg0: i32, %arg1: i32) -> (i32, i32) {
    %c0_i32 = arith.constant 0 : i32
    %c0_i32_0 = arith.constant 0 : i32
    %c0_i32_1 = arith.constant 0 : i32
    return %c0_i32, %c0_i32_0 : i32, i32
  }
  func.func @transform_9(%arg0: i32, %arg1: i32) -> (i32, i32) {
    %c0_i32 = arith.constant 0 : i32
    %c0_i32_0 = arith.constant 0 : i32
    %c0_i32_1 = arith.constant 0 : i32
    return %c0_i32, %c0_i32_0 : i32, i32
  }
  func.func @transform_10(%arg0: i32, %arg1: i32) -> (i32, i32) {
    %c0_i32 = arith.constant 0 : i32
    %c0_i32_0 = arith.constant 0 : i32
    %c0_i32_1 = arith.constant 0 : i32
    return %c0_i32, %c0_i32_0 : i32, i32
  }
  func.func @transform_11(%arg0: i32, %arg1: i32) -> (i32, i32) {
    %c0_i32 = arith.constant 0 : i32
    %c0_i32_0 = arith.constant 0 : i32
    %c0_i32_1 = arith.constant 0 : i32
    return %c0_i32, %c0_i32_0 : i32, i32
  }
  func.func @transform_12(%arg0: i32, %arg1: i32) -> (i32, i32) {
    %c0_i32 = arith.constant 0 : i32
    %c0_i32_0 = arith.constant 0 : i32
    %c0_i32_1 = arith.constant 0 : i32
    return %c0_i32, %c0_i32_0 : i32, i32
  }
  func.func @transform_13(%arg0: i32, %arg1: i32) -> (i32, i32) {
    %c0_i32 = arith.constant 0 : i32
    %c0_i32_0 = arith.constant 0 : i32
    %c0_i32_1 = arith.constant 0 : i32
    return %c0_i32, %c0_i32_0 : i32, i32
  }
  func.func @transform_14(%arg0: i32, %arg1: i32) -> (i32, i32) {
    %c0_i32 = arith.constant 0 : i32
    %c0_i32_0 = arith.constant 0 : i32
    %c0_i32_1 = arith.constant 0 : i32
    return %c0_i32, %c0_i32_0 : i32, i32
  }
  func.func @transform_15(%arg0: i32, %arg1: i32) -> (i32, i32) {
    %c0_i32 = arith.constant 0 : i32
    %c0_i32_0 = arith.constant 0 : i32
    %c0_i32_1 = arith.constant 0 : i32
    return %c0_i32, %c0_i32_0 : i32, i32
  }
  func.func @transform_16(%arg0: i32, %arg1: i32) -> (i32, i32) {
    %c0_i32 = arith.constant 0 : i32
    %c0_i32_0 = arith.constant 0 : i32
    %c0_i32_1 = arith.constant 0 : i32
    return %c0_i32, %c0_i32_0 : i32, i32
  }
  func.func @transform_17(%arg0: i32, %arg1: i32) -> (i32, i32, i32) {
    %c0_i32 = arith.constant 0 : i32
    %c0_i32_0 = arith.constant 0 : i32
    return %arg0, %arg1, %c0_i32 : i32, i32, i32
  }
}

</mosaic_0001>

<bundles_post_ra>
// kernel: tpu_custom_call.1
= control target key start
LH: loop header
LB: loop body
LE: loop exit
PB: predicated region body
PF: predicated region fallthrough
CT: control target
= control target key end

     0   :  { %s4071_s0 = inlined_call_operand.hbm [shape: f32[2,8,32], index: 0, kind: input, shape index: {}]   ;;  %s4072_s1 = inlined_call_operand.hbm [shape: bf16[32,32], index: 1, kind: input, shape index: {}]   ;;  %s4073_s2 = inlined_call_operand.hbm [shape: f32[1,32], index: 2, kind: input, shape index: {}]   ;;  %s4074_s3 = inlined_call_operand.hbm [shape: bf16[32,32], index: 3, kind: input, shape index: {}]   ;;  %s4075_s4 = inlined_call_operand.hbm [shape: f32[1,32], index: 4, kind: input, shape index: {}]   ;;  %s4076_s5 = inlined_call_operand.hbm [shape: bf16[32,32], index: 5, kind: input, shape index: {}]   ;;  %s4077_s6 = inlined_call_operand.hbm [shape: f32[1,32], index: 6, kind: input, shape index: {}]   ;;  %s4078_s7 = inlined_call_operand.hbm [shape: bf16[32,32], index: 7, kind: input, shape index: {}]   ;;  %s4079_s8 = inlined_call_operand.hbm [shape: f32[1,32], index: 8, kind: input, shape index: {}]   ;;  %s4080_s9 = inlined_call_operand.hbm [shape: f32[1,32], index: 9, kind: input, shape index: {}]   ;;  %s4081_s10 = inlined_call_operand.hbm [shape: f32[1,32], index: 10, kind: input, shape index: {}]   ;;  %s4082_s11 = inlined_call_operand.hbm [shape: bf16[32,128], index: 11, kind: input, shape index: {}]   ;;  %s4083_s12 = inlined_call_operand.hbm [shape: f32[1,128], index: 12, kind: input, shape index: {}]   ;;  %s4084_s13 = inlined_call_operand.hbm [shape: bf16[128,32], index: 13, kind: input, shape index: {}]   ;;  %s4085_s14 = inlined_call_operand.hbm [shape: f32[1,32], index: 14, kind: input, shape index: {}]   ;;  %s4086_s15 = inlined_call_operand.hbm [shape: f32[1,32], index: 15, kind: input, shape index: {}]   ;;  %s4087_s16 = inlined_call_operand.hbm [shape: f32[1,32], index: 16, kind: input, shape index: {}]   ;;  %s4088_s17 = inlined_call_operand.hbm [shape: f32[2,8,32], index: 17, kind: output, shape index: {}]  }
   0x1   :  { %4107 = sst [smem:[#allocation50_spill]] %s4071_s0 }
   0x2   :  { %4108 = sst [smem:[#allocation51_spill]] %s4072_s1 }
   0x3   :  { %4109 = sst [smem:[#allocation52_spill]] %s4073_s2 }
   0x4   :  { %4110 = sst [smem:[#allocation53_spill]] %s4074_s3 }
   0x5   :  { %4111 = sst [smem:[#allocation54_spill]] %s4075_s4 }
   0x6   :  { %4112 = sst [smem:[#allocation55_spill]] %s4076_s5 }
   0x7   :  { %4113 = sst [smem:[#allocation56_spill]] %s4087_s16 }
   0x8   :  { %4114 = sst [smem:[#allocation57_spill]] %s4088_s17 }
   0x9   :  { %22 = vsyncpa [#allocation5], 0 }
   0xa   :  { %24 = vsyncpa [#allocation5 + $0x1], 0 }
   0xb   :  { %25 = vsyncpa [#allocation8], 0 }
   0xc   :  { %26 = vsyncpa [#allocation11], 0 }
   0xd   :  { %27 = vsyncpa [#allocation14], 0 }
   0xe   :  { %28 = vsyncpa [#allocation17], 0 }
   0xf   :  { %29 = vsyncpa [#allocation20], 0 }
  0x10   :  { %30 = vsyncpa [#allocation23], 0 }
  0x11   :  { %31 = vsyncpa [#allocation26], 0 }
  0x12   :  { %32 = vsyncpa [#allocation29], 0 }
  0x13   :  { %33 = vsyncpa [#allocation6], 0 }
  0x14   :  { %35 = vsyncpa [#allocation6 + $0x1], 0  ;;  %s3387_s24 = smov 0   ;;  %s3389_s25 = smov 0  }
  0x15   :  { %s3391_s26 = smov 0   ;;  %s3393_s27 = smov 0  }
  0x16   :  { %s3395_s28 = smov 0   ;;  %s3397_s29 = smov 0  }
  0x17 LB: > { %4115 = sst [smem:[#allocation42_spill]] %s3250_s24  ;;  %s4091_s0 = sadd.s32 4294967295, %s3270_s29   ;;  %s3270_s29 = sphi %s3397_s29, %s41_s29   ;;  %s3266_s28 = sphi %s3395_s28, %s4167_s28   ;;  %s3262_s27 = sphi %s3393_s27, %s4166_s27   ;;  %s3258_s26 = sphi %s3391_s26, %s4165_s26   ;;  %s3254_s25 = sphi %s3389_s25, %s4162_s25   ;;  %s3250_s24 = sphi %s3387_s24, %s4161_s24  }
  0x18   : > { %4116 = sst [smem:[#allocation43_spill]] %s3254_s25  ;;  %p2152_p0 = scmp.ge.s32.totalorder %s3270_s29, 1 }
  0x19   : > { %4117 = sst [smem:[#allocation44_spill]] %s3258_s26  ;;  %p3421_p1 = scmp.eq.s32.totalorder %s4091_s0, 0 }
  0x1a   : > { %4118 = sst [smem:[#allocation45_spill]] %s3262_s27  ;;  %p448_p2 = scmp.lt.s32.totalorder %s3270_s29, 3 }
  0x1b   : > { %4119 = sst [smem:[#allocation46_spill]] %s3266_s28  ;;  %s3272_s19 = smov [#allocation7]  }
  0x1c   : > { %4120 = sst [smem:[#allocation47_spill]] %s3270_s29  ;;  %p3426_p3 = pnand %p2152_p0, %p448_p2 }
  0x1d   : > { %s4121_s30 = scalar_select %p3421_p1, 1, 0 }
  0x1e   : > { %s4123_s18 = scalar_select %p3426_p3, 1, 0 }
  0x1f   : > { %4122 = sst [smem:[#allocation48_spill]] %s4121_s30  ;;  %s460_s1 = sshll.u32 %s3272_s19, 4  ;;  %s3430_s1 = int_to_ptr.vmem [resolvable:$true] %s460_s1 }
  0x20   : > { %4124 = sst [smem:[#allocation49_spill]] %s4123_s18  ;;  %p2476_p4 = pneg %p3426_p3 }
  0x21   : > { %s3273_s21 = smov [#allocation10]   ;;  %s3274_s23 = smov [#allocation13]  }
  0x22   : > { %p3437_p6 = pnand %p2476_p4, %p3421_p1  ;;  %s484_s22 = sshll.u32 %s3273_s21, 4  ;;  %s3441_s22 = int_to_ptr.vmem [resolvable:$true] %s484_s22 }
  0x23   : > { %s3443_s0 = sshll.u32 %s3274_s23, 4  ;;  %s4126_s27 = sld [smem:[#allocation51_spill]]  ;;  %s509_s0 = int_to_ptr.vmem [resolvable:$true] %s3443_s0 }
  0x24   : > { %p3453_p8 = pneg %p3437_p6 }
  0x29   : > { %s4127_s16 = smov %s4126_s27  ;;  %s2678_s24 = scalar_lea.hbm %s4126_s27, 256 }
  0x2a   : > { %p2679_p7 = scmp.ne.s32.totalorder %s4127_s16, %s2678_s24  ;;  %p2685_p11 = scmp.lt.u32.totalorder %s2678_s24, %s4127_s16 }
  0x2c   : > { %p2681_p9 = pnand %p3453_p8, %p2679_p7 }
  0x2e   : > { %p2682_p10 = pneg %p2681_p9 }
  0x30   : > { %p2687_p12 = pnand %p2685_p11, %p2682_p10 }
  0x32   : > { %2690 = shalt.err (!%p2687_p12)
}
  0x33   : > { %s2691_s17 = scalar_lea.vmem %s3430_s1, 256  ;;  %p2699_p4 = scmp.lt.s32.totalorder %s3430_s1, %s3430_s1 }
  0x34   : > { %p2692_p13 = scmp.ne.s32.totalorder %s3430_s1, %s2691_s17  ;;  %p2700_p5 = scmp.lt.s32.totalorder %s2691_s17, %s2691_s17 }
  0x36   : > { %p2694_p0 = pnand %p2692_p13, %p3453_p8  ;;  %p2701_p7 = por %p2700_p5, %p2699_p4 }
  0x38   : > { %p2695_p2 = pneg %p2694_p0 }
  0x3a   : > { %p2702_p9 = pnand %p2701_p7, %p2695_p2 }
  0x3c   : > { %2705 = shalt.err (!%p2702_p9)
}
  0x3d   : > { %s3275_s25 = smov 64   ;;  %s3276_s24 = smov 4  }
  0x3e   : > { %2479 = dma.hbm_to_vmem [thread:$0]  (!%p3437_p6), %s4127_s16, 256, %s3430_s1, [#allocation8], %s3275_s25, %s3275_s25, %s3276_s24  }
  0x3f   : > { %s4129_s3 = sld [smem:[#allocation53_spill]] }
  0x45   : > { %s2706_s23 = scalar_lea.hbm %s4129_s3, 256 }
  0x46   : > { %p2707_p5 = scmp.ne.s32.totalorder %s4129_s3, %s2706_s23  ;;  %p2713_p12 = scmp.lt.u32.totalorder %s2706_s23, %s4129_s3 }
  0x48   : > { %p2709_p10 = pnand %p2707_p5, %p3453_p8 }
  0x4a   : > { %p2710_p11 = pneg %p2709_p10 }
  0x4c   : > { %p2715_p13 = pnand %p2713_p12, %p2710_p11 }
  0x4e   : > { %2718 = shalt.err (!%p2715_p13)
}
  0x4f   : > { %s2719_s1 = scalar_lea.vmem %s3441_s22, 256  ;;  %p2727_p7 = scmp.lt.s32.totalorder %s3441_s22, %s3441_s22 }
  0x50   : > { %p2720_p0 = scmp.ne.s32.totalorder %s3441_s22, %s2719_s1  ;;  %p2728_p9 = scmp.lt.s32.totalorder %s2719_s1, %s2719_s1 }
  0x52   : > { %p2722_p2 = pnand %p2720_p0, %p3453_p8  ;;  %p2729_p5 = por %p2728_p9, %p2727_p7 }
  0x54   : > { %p2723_p4 = pneg %p2722_p2 }
  0x56   : > { %p2730_p10 = pnand %p2729_p5, %p2723_p4 }
  0x58   : > { %2733 = shalt.err (!%p2730_p10)
}
  0x59   : > { %2485 = dma.hbm_to_vmem [thread:$0]  (!%p3437_p6), %s4129_s3, 256, %s3441_s22, [#allocation11], %s3275_s25, %s3275_s25, %s3276_s24  }
  0x5a   : > { %s4130_s5 = sld [smem:[#allocation55_spill]] }
  0x60   : > { %s2734_s18 = scalar_lea.hbm %s4130_s5, 256 }
  0x61   : > { %p2735_p11 = scmp.ne.s32.totalorder %s4130_s5, %s2734_s18  ;;  %p2741_p0 = scmp.lt.u32.totalorder %s2734_s18, %s4130_s5 }
  0x63   : > { %p2737_p12 = pnand %p2735_p11, %p3453_p8 }
  0x65   : > { %p2738_p13 = pneg %p2737_p12 }
  0x67   : > { %p2743_p2 = pnand %p2741_p0, %p2738_p13 }
  0x69   : > { %2746 = shalt.err (!%p2743_p2)
}
  0x6a   : > { %s2747_s1 = scalar_lea.vmem %s509_s0, 256  ;;  %p2755_p5 = scmp.lt.s32.totalorder %s509_s0, %s509_s0 }
  0x6b   : > { %p2748_p4 = scmp.ne.s32.totalorder %s509_s0, %s2747_s1  ;;  %p2756_p10 = scmp.lt.s32.totalorder %s2747_s1, %s2747_s1 }
  0x6d   : > { %p2750_p7 = pnand %p2748_p4, %p3453_p8  ;;  %p2757_p3 = por %p2756_p10, %p2755_p5 }
  0x6f   : > { %p2751_p9 = pneg %p2750_p7 }
  0x71   : > { %p2758_p1 = pnand %p2757_p3, %p2751_p9 }
  0x73   : > { %2761 = shalt.err (!%p2758_p1)
}
  0x74   : > { %2491 = dma.hbm_to_vmem [thread:$0]  (!%p3437_p6), %s4130_s5, 256, %s509_s0, [#allocation14], %s3275_s25, %s3275_s25, %s3276_s24  }
  0x75   : > { %s3277_s28 = smov [#allocation16]   ;;  %s3278_s27 = smov [#allocation19]  }
  0x76   : > { %s532_s29 = sshll.u32 %s3277_s28, 4  ;;  %s557_s18 = sshll.u32 %s3278_s27, 4  ;;  %s533_s29 = int_to_ptr.vmem [resolvable:$true] %s532_s29  ;;  %s558_s18 = int_to_ptr.vmem [resolvable:$true] %s557_s18 }
  0x77   : > { %s2762_s23 = scalar_lea.hbm %s4078_s7, 256 }
  0x78   : > { %p2763_p1 = scmp.ne.s32.totalorder %s4078_s7, %s2762_s23  ;;  %p2769_p12 = scmp.lt.u32.totalorder %s2762_s23, %s4078_s7 }
  0x7a   : > { %p2765_p3 = pnand %p2763_p1, %p3453_p8 }
  0x7c   : > { %p2766_p11 = pneg %p2765_p3 }
  0x7e   : > { %p2771_p13 = pnand %p2769_p12, %p2766_p11 }
  0x80   : > { %2774 = shalt.err (!%p2771_p13)
}
  0x81   : > { %s2775_s0 = scalar_lea.vmem %s533_s29, 256  ;;  %p2783_p7 = scmp.lt.s32.totalorder %s533_s29, %s533_s29 }
  0x82   : > { %p2776_p0 = scmp.ne.s32.totalorder %s533_s29, %s2775_s0  ;;  %p2784_p9 = scmp.lt.s32.totalorder %s2775_s0, %s2775_s0 }
  0x84   : > { %p2778_p2 = pnand %p2776_p0, %p3453_p8  ;;  %p2785_p5 = por %p2784_p9, %p2783_p7 }
  0x86   : > { %p2779_p4 = pneg %p2778_p2 }
  0x88   : > { %p2786_p10 = pnand %p2785_p5, %p2779_p4 }
  0x8a   : > { %2789 = shalt.err (!%p2786_p10)
}
  0x8b   : > { %2497 = dma.hbm_to_vmem [thread:$0]  (!%p3437_p6), %s4078_s7, 256, %s533_s29, [#allocation17], %s3275_s25, %s3275_s25, %s3276_s24  }
  0x8c   : > { %s2790_s19 = scalar_lea.hbm %s4080_s9, 16 }
  0x8d   : > { %p2791_p1 = scmp.ne.s32.totalorder %s4080_s9, %s2790_s19  ;;  %p2797_p12 = scmp.lt.u32.totalorder %s2790_s19, %s4080_s9 }
  0x8f   : > { %p2793_p3 = pnand %p2791_p1, %p3453_p8 }
  0x91   : > { %p2794_p11 = pneg %p2793_p3 }
  0x93   : > { %p2799_p13 = pnand %p2797_p12, %p2794_p11 }
  0x95   : > { %2802 = shalt.err (!%p2799_p13)
}
  0x96   : > { %s2803_s22 = scalar_lea.vmem %s558_s18, 16  ;;  %s2810_s29 = scalar_lea.vmem %s558_s18, 32 }
  0x97   : > { %p2804_p0 = scmp.ne.s32.totalorder %s558_s18, %s2803_s22  ;;  %p2811_p7 = scmp.lt.s32.totalorder %s558_s18, %s558_s18 }
  0x98   : > { %p2812_p9 = scmp.lt.s32.totalorder %s2810_s29, %s2803_s22 }
  0x99   : > { %p2806_p2 = pnand %p2804_p0, %p3453_p8 }
  0x9a   : > { %p2813_p5 = por %p2812_p9, %p2811_p7 }
  0x9b   : > { %p2807_p4 = pneg %p2806_p2 }
  0x9d   : > { %p2814_p10 = pnand %p2813_p5, %p2807_p4 }
  0x9f   : > { %2817 = shalt.err (!%p2814_p10)
}
  0xa0   : > { %2503 = dma.hbm_to_vmem [thread:$0]  (!%p3437_p6), %s4080_s9, 16, %s558_s18, [#allocation20]  }
  0xa1   : > { %s3279_s26 = smov [#allocation22]   ;;  %s3280_s27 = smov [#allocation25]  }
  0xa2   : > { %s578_s28 = sshll.u32 %s3279_s26, 4  ;;  %s602_s19 = sshll.u32 %s3280_s27, 4  ;;  %s579_s28 = int_to_ptr.vmem [resolvable:$true] %s578_s28  ;;  %s603_s19 = int_to_ptr.vmem [resolvable:$true] %s602_s19 }
  0xa3   : > { %s2818_s17 = scalar_lea.hbm %s4082_s11, 256 }
  0xa4   : > { %p2819_p1 = scmp.ne.s32.totalorder %s4082_s11, %s2818_s17  ;;  %p2825_p12 = scmp.lt.u32.totalorder %s2818_s17, %s4082_s11 }
  0xa6   : > { %p2821_p3 = pnand %p2819_p1, %p3453_p8 }
  0xa8   : > { %p2822_p11 = pneg %p2821_p3 }
  0xaa   : > { %p2827_p13 = pnand %p2825_p12, %p2822_p11 }
  0xac   : > { %2830 = shalt.err (!%p2827_p13)
}
  0xad   : > { %s2831_s18 = scalar_lea.vmem %s579_s28, 256  ;;  %p2839_p7 = scmp.lt.s32.totalorder %s579_s28, %s579_s28 }
  0xae   : > { %p2832_p0 = scmp.ne.s32.totalorder %s579_s28, %s2831_s18  ;;  %p2840_p9 = scmp.lt.s32.totalorder %s2831_s18, %s2831_s18 }
  0xb0   : > { %p2834_p2 = pnand %p2832_p0, %p3453_p8  ;;  %p2841_p5 = por %p2840_p9, %p2839_p7 }
  0xb2   : > { %p2835_p4 = pneg %p2834_p2 }
  0xb4   : > { %p2842_p10 = pnand %p2841_p5, %p2835_p4 }
  0xb6   : > { %2845 = shalt.err (!%p2842_p10)
}
  0xb7   : > { %2509 = dma.hbm_to_vmem [thread:$0]  (!%p3437_p6), %s4082_s11, 256, %s579_s28, [#allocation23], %s3275_s25, %s3275_s25, %s3276_s24  }
  0xb8   : > { %s2846_s23 = scalar_lea.hbm %s4084_s13, 1024 }
  0xb9   : > { %p2847_p1 = scmp.ne.s32.totalorder %s4084_s13, %s2846_s23  ;;  %p2853_p12 = scmp.lt.u32.totalorder %s2846_s23, %s4084_s13 }
  0xbb   : > { %p2849_p3 = pnand %p2847_p1, %p3453_p8 }
  0xbd   : > { %p2850_p11 = pneg %p2849_p3 }
  0xbf   : > { %p2855_p13 = pnand %p2853_p12, %p2850_p11 }
  0xc1   : > { %2858 = shalt.err (!%p2855_p13)
}
  0xc2   : > { %s2859_s0 = scalar_lea.vmem %s603_s19, 1024  ;;  %p2867_p7 = scmp.lt.s32.totalorder %s603_s19, %s603_s19 }
  0xc3   : > { %p2860_p0 = scmp.ne.s32.totalorder %s603_s19, %s2859_s0  ;;  %p2868_p9 = scmp.lt.s32.totalorder %s2859_s0, %s2859_s0 }
  0xc5   : > { %p2862_p2 = pnand %p2860_p0, %p3453_p8  ;;  %p2869_p5 = por %p2868_p9, %p2867_p7 }
  0xc7   : > { %p2863_p4 = pneg %p2862_p2 }
  0xc9   : > { %p2870_p10 = pnand %p2869_p5, %p2863_p4 }
  0xcb   : > { %2873 = shalt.err (!%p2870_p10)
}
  0xcc   : > { %2515 = dma.hbm_to_vmem [thread:$0]  (!%p3437_p6), %s4084_s13, 1024, %s603_s19, [#allocation26], %s3275_s25, %s3275_s25, %s3276_s24  }
  0xcd   : > { %s3281_s3 = smov [#allocation28]   ;;  %s3282_s27 = smov [#allocation9]  }
  0xce   : > { %s627_s26 = sshll.u32 %s3281_s3, 4  ;;  %s474_s21 = sshll.u32 %s3282_s27, 4  ;;  %s628_s26 = int_to_ptr.vmem [resolvable:$true] %s627_s26  ;;  %s475_s21 = int_to_ptr.vmem [resolvable:$true] %s474_s21 }
  0xcf   : > { %s2874_s1 = scalar_lea.hbm %s4086_s15, 16 }
  0xd0   : > { %p2875_p1 = scmp.ne.s32.totalorder %s4086_s15, %s2874_s1  ;;  %p2881_p12 = scmp.lt.u32.totalorder %s2874_s1, %s4086_s15 }
  0xd2   : > { %p2877_p3 = pnand %p2875_p1, %p3453_p8 }
  0xd4   : > { %p2878_p11 = pneg %p2877_p3 }
  0xd6   : > { %p2883_p13 = pnand %p2881_p12, %p2878_p11 }
  0xd8   : > { %2886 = shalt.err (!%p2883_p13)
}
  0xd9   : > { %s2887_s25 = scalar_lea.vmem %s628_s26, 16  ;;  %s2894_s24 = scalar_lea.vmem %s628_s26, 32 }
  0xda   : > { %p2888_p0 = scmp.ne.s32.totalorder %s628_s26, %s2887_s25  ;;  %p2895_p7 = scmp.lt.s32.totalorder %s628_s26, %s628_s26 }
  0xdb   : > { %p2896_p9 = scmp.lt.s32.totalorder %s2894_s24, %s2887_s25 }
  0xdc   : > { %p2890_p2 = pnand %p2888_p0, %p3453_p8 }
  0xdd   : > { %p2897_p5 = por %p2896_p9, %p2895_p7 }
  0xde   : > { %p2891_p4 = pneg %p2890_p2 }
  0xe0   : > { %p2898_p10 = pnand %p2897_p5, %p2891_p4 }
  0xe2   : > { %2901 = shalt.err (!%p2898_p10)
}
  0xe3   : > { %2521 = dma.hbm_to_vmem [thread:$0]  (!%p3437_p6), %s4086_s15, 16, %s628_s26, [#allocation29]  }
  0xe4   : > { %s4131_s2 = sld [smem:[#allocation52_spill]] }
  0xea   : > { %s2902_s23 = scalar_lea.hbm %s4131_s2, 16 }
  0xeb   : > { %p2903_p1 = scmp.ne.s32.totalorder %s4131_s2, %s2902_s23  ;;  %p2909_p12 = scmp.lt.u32.totalorder %s2902_s23, %s4131_s2 }
  0xed   : > { %p2905_p3 = pnand %p2903_p1, %p3453_p8 }
  0xef   : > { %p2906_p11 = pneg %p2905_p3 }
  0xf1   : > { %p2911_p13 = pnand %p2909_p12, %p2906_p11 }
  0xf3   : > { %2914 = shalt.err (!%p2911_p13)
}
  0xf4   : > { %s2915_s0 = scalar_lea.vmem %s475_s21, 16  ;;  %s2922_s26 = scalar_lea.vmem %s475_s21, 32 }
  0xf5   : > { %p2916_p0 = scmp.ne.s32.totalorder %s475_s21, %s2915_s0  ;;  %p2923_p7 = scmp.lt.s32.totalorder %s475_s21, %s475_s21 }
  0xf6   : > { %p2924_p9 = scmp.lt.s32.totalorder %s2922_s26, %s2915_s0 }
  0xf7   : > { %p2918_p2 = pnand %p2916_p0, %p3453_p8 }
  0xf8   : > { %p2925_p5 = por %p2924_p9, %p2923_p7 }
  0xf9   : > { %p2919_p4 = pneg %p2918_p2 }
  0xfb   : > { %p2926_p10 = pnand %p2925_p5, %p2919_p4 }
  0xfd   : > { %2929 = shalt.err (!%p2926_p10)
}
  0xfe   : > { %2482 = dma.hbm_to_vmem [thread:$0]  (!%p3437_p6), %s4131_s2, 16, %s475_s21, [#allocation8]  }
  0xff   : > { %s3283_s24 = smov [#allocation12]   ;;  %s3284_s18 = smov [#allocation15]  }
 0x100   : > { %s498_s19 = sshll.u32 %s3283_s24, 4  ;;  %s522_s3 = sshll.u32 %s3284_s18, 4  ;;  %s499_s19 = int_to_ptr.vmem [resolvable:$true] %s498_s19  ;;  %s523_s3 = int_to_ptr.vmem [resolvable:$true] %s522_s3 }
 0x101   : > { %s4132_s4 = sld [smem:[#allocation54_spill]] }
 0x107   : > { %s2930_s17 = scalar_lea.hbm %s4132_s4, 16 }
 0x108   : > { %p2931_p1 = scmp.ne.s32.totalorder %s4132_s4, %s2930_s17  ;;  %p2937_p12 = scmp.lt.u32.totalorder %s2930_s17, %s4132_s4 }
 0x10a   : > { %p2933_p3 = pnand %p2931_p1, %p3453_p8 }
 0x10c   : > { %p2934_p11 = pneg %p2933_p3 }
 0x10e   : > { %p2939_p13 = pnand %p2937_p12, %p2934_p11 }
 0x110   : > { %2942 = shalt.err (!%p2939_p13)
}
 0x111   : > { %s2943_s21 = scalar_lea.vmem %s499_s19, 16  ;;  %s2950_s26 = scalar_lea.vmem %s499_s19, 32 }
 0x112   : > { %p2944_p0 = scmp.ne.s32.totalorder %s499_s19, %s2943_s21  ;;  %p2951_p7 = scmp.lt.s32.totalorder %s499_s19, %s499_s19 }
 0x113   : > { %p2952_p9 = scmp.lt.s32.totalorder %s2950_s26, %s2943_s21 }
 0x114   : > { %p2946_p2 = pnand %p2944_p0, %p3453_p8 }
 0x115   : > { %p2953_p5 = por %p2952_p9, %p2951_p7 }
 0x116   : > { %p2947_p4 = pneg %p2946_p2 }
 0x118   : > { %p2954_p10 = pnand %p2953_p5, %p2947_p4 }
 0x11a   : > { %2957 = shalt.err (!%p2954_p10)
}
 0x11b   : > { %2488 = dma.hbm_to_vmem [thread:$0]  (!%p3437_p6), %s4132_s4, 16, %s499_s19, [#allocation11]  }
 0x11c   : > { %s2958_s27 = scalar_lea.hbm %s4077_s6, 16 }
 0x11d   : > { %p2959_p1 = scmp.ne.s32.totalorder %s4077_s6, %s2958_s27  ;;  %p2965_p12 = scmp.lt.u32.totalorder %s2958_s27, %s4077_s6 }
 0x11f   : > { %p2961_p3 = pnand %p2959_p1, %p3453_p8 }
 0x121   : > { %p2962_p11 = pneg %p2961_p3 }
 0x123   : > { %p2967_p13 = pnand %p2965_p12, %p2962_p11 }
 0x125   : > { %2970 = shalt.err (!%p2967_p13)
}
 0x126   : > { %s2971_s29 = scalar_lea.vmem %s523_s3, 16  ;;  %s2978_s19 = scalar_lea.vmem %s523_s3, 32 }
 0x127   : > { %p2972_p0 = scmp.ne.s32.totalorder %s523_s3, %s2971_s29  ;;  %p2979_p7 = scmp.lt.s32.totalorder %s523_s3, %s523_s3 }
 0x128   : > { %p2980_p9 = scmp.lt.s32.totalorder %s2978_s19, %s2971_s29 }
 0x129   : > { %p2974_p2 = pnand %p2972_p0, %p3453_p8 }
 0x12a   : > { %p2981_p5 = por %p2980_p9, %p2979_p7 }
 0x12b   : > { %p2975_p4 = pneg %p2974_p2 }
 0x12d   : > { %p2982_p10 = pnand %p2981_p5, %p2975_p4 }
 0x12f   : > { %2985 = shalt.err (!%p2982_p10)
}
 0x130   : > { %2494 = dma.hbm_to_vmem [thread:$0]  (!%p3437_p6), %s4077_s6, 16, %s523_s3, [#allocation14]  }
 0x131   : > { %s3285_s26 = smov [#allocation18]   ;;  %s3286_s25 = smov [#allocation21]  }
 0x132   : > { %s546_s28 = sshll.u32 %s3285_s26, 4  ;;  %s568_s24 = sshll.u32 %s3286_s25, 4  ;;  %s547_s28 = int_to_ptr.vmem [resolvable:$true] %s546_s28  ;;  %s569_s24 = int_to_ptr.vmem [resolvable:$true] %s568_s24 }
 0x133   : > { %s2986_s23 = scalar_lea.hbm %s4079_s8, 16 }
 0x134   : > { %p2987_p1 = scmp.ne.s32.totalorder %s4079_s8, %s2986_s23  ;;  %p2993_p12 = scmp.lt.u32.totalorder %s2986_s23, %s4079_s8 }
 0x136   : > { %p2989_p3 = pnand %p2987_p1, %p3453_p8 }
 0x138   : > { %p2990_p11 = pneg %p2989_p3 }
 0x13a   : > { %p2995_p13 = pnand %p2993_p12, %p2990_p11 }
 0x13c   : > { %2998 = shalt.err (!%p2995_p13)
}
 0x13d   : > { %s2999_s3 = scalar_lea.vmem %s547_s28, 16  ;;  %s3006_s19 = scalar_lea.vmem %s547_s28, 32 }
 0x13e   : > { %p3000_p0 = scmp.ne.s32.totalorder %s547_s28, %s2999_s3  ;;  %p3007_p7 = scmp.lt.s32.totalorder %s547_s28, %s547_s28 }
 0x13f   : > { %p3008_p9 = scmp.lt.s32.totalorder %s3006_s19, %s2999_s3 }
 0x140   : > { %p3002_p2 = pnand %p3000_p0, %p3453_p8 }
 0x141   : > { %p3009_p5 = por %p3008_p9, %p3007_p7 }
 0x142   : > { %p3003_p4 = pneg %p3002_p2 }
 0x144   : > { %p3010_p10 = pnand %p3009_p5, %p3003_p4 }
 0x146   : > { %3013 = shalt.err (!%p3010_p10)
}
 0x147   : > { %2500 = dma.hbm_to_vmem [thread:$0]  (!%p3437_p6), %s4079_s8, 16, %s547_s28, [#allocation17]  }
 0x148   : > { %s3014_s18 = scalar_lea.hbm %s4081_s10, 16 }
 0x149   : > { %p3015_p1 = scmp.ne.s32.totalorder %s4081_s10, %s3014_s18  ;;  %p3021_p12 = scmp.lt.u32.totalorder %s3014_s18, %s4081_s10 }
 0x14b   : > { %p3017_p3 = pnand %p3015_p1, %p3453_p8 }
 0x14d   : > { %p3018_p11 = pneg %p3017_p3 }
 0x14f   : > { %p3023_p13 = pnand %p3021_p12, %p3018_p11 }
 0x151   : > { %3026 = shalt.err (!%p3023_p13)
}
 0x152   : > { %s3027_s22 = scalar_lea.vmem %s569_s24, 16  ;;  %s3034_s28 = scalar_lea.vmem %s569_s24, 32 }
 0x153   : > { %p3028_p0 = scmp.ne.s32.totalorder %s569_s24, %s3027_s22  ;;  %p3035_p7 = scmp.lt.s32.totalorder %s569_s24, %s569_s24 }
 0x154   : > { %p3036_p9 = scmp.lt.s32.totalorder %s3034_s28, %s3027_s22 }
 0x155   : > { %p3030_p2 = pnand %p3028_p0, %p3453_p8 }
 0x156   : > { %p3037_p5 = por %p3036_p9, %p3035_p7 }
 0x157   : > { %p3031_p4 = pneg %p3030_p2 }
 0x159   : > { %p3038_p10 = pnand %p3037_p5, %p3031_p4 }
 0x15b   : > { %3041 = shalt.err (!%p3038_p10)
}
 0x15c   : > { %2506 = dma.hbm_to_vmem [thread:$0]  (!%p3437_p6), %s4081_s10, 16, %s569_s24, [#allocation20]  }
 0x15d   : > { %s3287_s19 = smov [#allocation24]   ;;  %s3288_s21 = smov [#allocation27]  }
 0x15e   : > { %s592_s0 = sshll.u32 %s3287_s19, 4  ;;  %s616_s26 = sshll.u32 %s3288_s21, 4  ;;  %s593_s0 = int_to_ptr.vmem [resolvable:$true] %s592_s0  ;;  %s617_s26 = int_to_ptr.vmem [resolvable:$true] %s616_s26 }
 0x15f   : > { %s3042_s27 = scalar_lea.hbm %s4083_s12, 16 }
 0x160   : > { %p3043_p1 = scmp.ne.s32.totalorder %s4083_s12, %s3042_s27  ;;  %p3049_p12 = scmp.lt.u32.totalorder %s3042_s27, %s4083_s12 }
 0x162   : > { %p3045_p3 = pnand %p3043_p1, %p3453_p8 }
 0x164   : > { %p3046_p11 = pneg %p3045_p3 }
 0x166   : > { %p3051_p13 = pnand %p3049_p12, %p3046_p11 }
 0x168   : > { %3054 = shalt.err (!%p3051_p13)
}
 0x169   : > { %s3055_s24 = scalar_lea.vmem %s593_s0, 16  ;;  %s3062_s28 = scalar_lea.vmem %s593_s0, 32 }
 0x16a   : > { %p3056_p0 = scmp.ne.s32.totalorder %s593_s0, %s3055_s24  ;;  %p3063_p7 = scmp.lt.s32.totalorder %s593_s0, %s593_s0 }
 0x16b   : > { %p3064_p9 = scmp.lt.s32.totalorder %s3062_s28, %s3055_s24 }
 0x16c   : > { %p3058_p2 = pnand %p3056_p0, %p3453_p8 }
 0x16d   : > { %p3065_p5 = por %p3064_p9, %p3063_p7 }
 0x16e   : > { %p3059_p4 = pneg %p3058_p2 }
 0x170   : > { %p3066_p10 = pnand %p3065_p5, %p3059_p4 }
 0x172   : > { %3069 = shalt.err (!%p3066_p10)
}
 0x173   : > { %2512 = dma.hbm_to_vmem [thread:$0]  (!%p3437_p6), %s4083_s12, 16, %s593_s0, [#allocation23]  }
 0x174   : > { %s3070_s25 = scalar_lea.hbm %s4085_s14, 16 }
 0x175   : > { %p3071_p1 = scmp.ne.s32.totalorder %s4085_s14, %s3070_s25  ;;  %p3077_p12 = scmp.lt.u32.totalorder %s3070_s25, %s4085_s14 }
 0x177   : > { %p3073_p3 = pnand %p3071_p1, %p3453_p8 }
 0x179   : > { %p3074_p11 = pneg %p3073_p3 }
 0x17b   : > { %p3079_p13 = pnand %p3077_p12, %p3074_p11 }
 0x17d   : > { %3082 = shalt.err (!%p3079_p13)
}
 0x17e   : > { %s3083_s1 = scalar_lea.vmem %s617_s26, 16  ;;  %s3090_s0 = scalar_lea.vmem %s617_s26, 32 }
 0x17f   : > { %p3084_p0 = scmp.ne.s32.totalorder %s617_s26, %s3083_s1  ;;  %p3091_p7 = scmp.lt.s32.totalorder %s617_s26, %s617_s26 }
 0x180   : > { %p3092_p9 = scmp.lt.s32.totalorder %s3090_s0, %s3083_s1 }
 0x181   : > { %p3086_p2 = pnand %p3084_p0, %p3453_p8 }
 0x182   : > { %p3093_p5 = por %p3092_p9, %p3091_p7 }
 0x183   : > { %p3087_p4 = pneg %p3086_p2 }
 0x185   : > { %p3094_p10 = pnand %p3093_p5, %p3087_p4 }
 0x187   : > { %3097 = shalt.err (!%p3094_p10)
}
 0x188   : > { %2518 = dma.hbm_to_vmem [thread:$0]  (!%p3437_p6), %s4085_s14, 16, %s617_s26, [#allocation26]  }
 0x189   : > { %s3289_s28 = smov [#allocation30]   ;;  %s4133_s21 = sld [smem:[#allocation56_spill]] }
 0x18a   : > { %s638_s29 = sshll.u32 %s3289_s28, 4  ;;  %s639_s29 = int_to_ptr.vmem [resolvable:$true] %s638_s29 }
 0x18f   : > { %s3098_s25 = scalar_lea.hbm %s4133_s21, 16 }
 0x190   : > { %p3099_p1 = scmp.ne.s32.totalorder %s4133_s21, %s3098_s25  ;;  %p3105_p12 = scmp.lt.u32.totalorder %s3098_s25, %s4133_s21 }
 0x192   : > { %p3101_p3 = pnand %p3099_p1, %p3453_p8 }
 0x194   : > { %p3102_p11 = pneg %p3101_p3 }
 0x196   : > { %p3107_p13 = pnand %p3105_p12, %p3102_p11 }
 0x198   : > { %3110 = shalt.err (!%p3107_p13)
}
 0x199   : > { %s3111_s26 = scalar_lea.vmem %s639_s29, 16  ;;  %s3118_s1 = scalar_lea.vmem %s639_s29, 32 }
 0x19a   : > { %p3112_p0 = scmp.ne.s32.totalorder %s639_s29, %s3111_s26  ;;  %p3119_p7 = scmp.lt.s32.totalorder %s639_s29, %s639_s29 }
 0x19b   : > { %p3120_p9 = scmp.lt.s32.totalorder %s3118_s1, %s3111_s26 }
 0x19c   : > { %p3114_p2 = pnand %p3112_p0, %p3453_p8 }
 0x19d   : > { %p3121_p5 = por %p3120_p9, %p3119_p7 }
 0x19e   : > { %p3115_p4 = pneg %p3114_p2 }
 0x1a0   : > { %p3122_p10 = pnand %p3121_p5, %p3115_p4 }
 0x1a2   : > { %3125 = shalt.err (!%p3122_p10)
}
 0x1a3   : > { %s4134_s24 = sld [smem:[#allocation47_spill]]  ;;  %s4135_s28 = sld [smem:[#allocation46_spill]] }
 0x1a4   : > { %s4136_s3 = sld [smem:[#allocation44_spill]]  ;;  %s4137_s19 = sld [smem:[#allocation43_spill]] }
 0x1a5   : > { %s4138_s30 = sld [smem:[#allocation42_spill]]  ;;  %s4139_s25 = sld [smem:[#allocation48_spill]] }
 0x1a6   : > { %2524 = dma.hbm_to_vmem [thread:$0]  (!%p3437_p6), %s4133_s21, 16, %s639_s29, [#allocation29]  }
 0x1a7   : > { %s4146_s2 = sld [smem:[#allocation50_spill]] }
 0x1a9   : > { %s2151_s18 = sadd.s32 4294967294, %s4134_s24   ;;  %s53_s27 = sadd.s32 1, %s4135_s28 }
 0x1aa   : > { %p55_p8 = scmp.ge.s32.totalorder %s53_s27, 2  ;;  %s60_s20 = sadd.s32 1, %s4136_s3 }
 0x1ab   : > { %p67_p1 = scmp.ne.s32.totalorder %s4136_s3, %s4137_s19  ;;  %p68_p3 = scmp.eq.s32.totalorder %s4134_s24, 0 }
 0x1ac   : > { %s4169_s27 = smov (%p55_p8, %s53_s27), 0  ;;  %p73_p12 = scmp.ne.s32.totalorder %s4137_s19, %s4138_s30 }
 0x1ad   : > { %p3776_p11 = por %p68_p3, %p67_p1  ;;  %s57_s29 = ssub.s32 %s4135_s28, %s4169_s27 }
 0x1ae   : > { %s4141_s17 = sadd.s32 4294967295, %s4134_s24   ;;  %p58_p13 = scmp.eq.s32.totalorder %s57_s29, 0 }
 0x1af   : > { %p435_p6 = scmp.eq.s32.totalorder %s4141_s17, 1  ;;  %p4142_p0 = scmp.ne.s32.totalorder %s4139_s25, 0 }
 0x1b0   : > { %p441_p7 = scmp.eq.s32.totalorder %s2151_s18, 1  ;;  %p2549_p5 = scmp.lt.s32.totalorder %s4134_s24, 2 }
 0x1b1   : > { %p3788_p2 = por %p4142_p0, %p73_p12  ;;  %p3792_p4 = por %p435_p6, %p67_p1 }
 0x1b2   : > { %s3797_s0 = scalar_select %p58_p13, %s4136_s3, %s60_s20  }
 0x1b3   : > { %s4144_s1 = scalar_select %p3792_p4, 1, 0 }
 0x1b4   : > { %p3799_p9 = por %p441_p7, %p73_p12  ;;  %s649_s19 = sand.u32 1, %s4136_s3  }
 0x1b5   : > { %s2171_s30 = sshll.u32 %s4135_s28, 7  ;;  %s2170_s29 = sshll.u32 %s649_s19, 3 }
 0x1b6   : > { %s4145_s22 = scalar_select %p3799_p9, 1, 0 }
 0x1b7   : > { %s3809_s4 = scalar_lea.hbm %s4146_s2, %s2171_s30  ;;  %s653_s18 = scalar_lea.vmem [#allocation4], %s2170_s29 }
 0x1b8   : > { %s660_s20 = sshll.u32 %s653_s18, 4  ;;  %p3813_p10 = pnand %p2549_p5, %p3776_p11  ;;  %s3817_s20 = int_to_ptr.vmem [resolvable:$true] %s660_s20 }
 0x1b9   : > { %s650_s24 = scalar_lea.sflag [#allocation5], %s649_s19  ;;  %s3126_s28 = scalar_lea.hbm %s3809_s4, 128 }
 0x1ba   : > { %p3127_p8 = scmp.ne.s32.totalorder %s3809_s4, %s3126_s28  ;;  %p3128_p1 = pneg %p3813_p10 }
 0x1bb   : > { %s3131_s23 = scalar_lea.hbm %s4146_s2, 256  ;;  %p3132_p11 = scmp.lt.u32.totalorder %s3809_s4, %s4146_s2 }
 0x1bc   : > { %p3129_p3 = pnand %p3128_p1, %p3127_p8  ;;  %p3133_p6 = scmp.lt.u32.totalorder %s3131_s23, %s3126_s28 }
 0x1bd   : > { %p3135_p0 = scmp.lt.u32.totalorder %s3126_s28, %s3809_s4 }
 0x1be   : > { %p3130_p12 = pneg %p3129_p3  ;;  %p3134_p13 = por %p3133_p6, %p3132_p11 }
 0x1c0   : > { %p3136_p7 = por %p3135_p0, %p3134_p13 }
 0x1c2   : > { %p3137_p5 = pnand %p3136_p7, %p3130_p12 }
 0x1c4   : > { %3140 = shalt.err (!%p3137_p5)
}
 0x1c5   : > { %s3141_s19 = scalar_lea.vmem %s3817_s20, 128  ;;  %s3290_s17 = smov [#allocation4]  }
 0x1c6   : > { %p3142_p8 = scmp.ne.s32.totalorder %s3817_s20, %s3141_s19  ;;  %s3146_s18 = sshll.u32 %s3290_s17, 4  ;;  %s3147_s18 = int_to_ptr.vmem [resolvable:$false] %s3146_s18 }
 0x1c7   : > { %s3148_s3 = scalar_lea.vmem %s3147_s18, 256  ;;  %p3149_p4 = scmp.lt.s32.totalorder %s3817_s20, %s3147_s18 }
 0x1c8   : > { %p3144_p3 = pnand %p3142_p8, %p3128_p1  ;;  %p3150_p11 = scmp.lt.s32.totalorder %s3148_s3, %s3141_s19 }
 0x1ca   : > { %p3145_p9 = pneg %p3144_p3  ;;  %p3151_p6 = por %p3150_p11, %p3149_p4 }
 0x1cc   : > { %p3152_p13 = pnand %p3151_p6, %p3145_p9 }
 0x1ce   : > { %3155 = shalt.err (!%p3152_p13)
}
 0x1cf   : > { %2528 = dma.hbm_to_vmem [thread:$0]  (!%p3813_p10), %s3809_s4, 128, %s3817_s20, %s650_s24  }
 0x1d0   : > { %s4148_s28 = sld [smem:[#allocation49_spill]] }
 0x1d6   : > { %p4149_p12 = scmp.ne.s32.totalorder %s4148_s28, 0 }
 0x1d7   : > { %s4150_s30 = sld [smem:[#allocation43_spill]] (!%p4149_p12) }
 0x1d8   : > { %669 = sbr.rel (%p4149_p12) target bundleno = 3744 (0xea0), region = 88 }
 0x1dd   : > { %s3847_s23 = sand.u32 (!%p4149_p12), 1, %s4150_s30  }
 0x1de   : > { %s2173_s29 = sshll.u32 (!%p4149_p12), %s3847_s23, 3  ;;  %s672_s25 = scalar_lea.sflag (!%p4149_p12), [#allocation5], %s3847_s23 }
 0x1df   : > { %s675_s19 = scalar_lea.vmem [#allocation4], %s2173_s29 }
 0x1e0   : > { %3209 = dma.done.wait (%p3788_p2), %s672_s25, 128  }
 0x1e1   : > { %3211 = vsyncadd (%p3788_p2), %s672_s25, 4294967168  ;;  %s4151_s4 = sld [smem:[#allocation48_spill]] }
 0x1e7   : > { %p4152_p4 = scmp.ne.s32.totalorder %s4151_s4, 0 }
 0x1e9   : > { %3213 = dma.done.wait (%p4152_p4), [#allocation8], 272  }
 0x1ea   : > { %3215 = vsyncadd (%p4152_p4), [#allocation8], 4294967024 }
 0x1eb   : > { %3217 = dma.done.wait (%p4152_p4), [#allocation11], 272  }
 0x1ec   : > { %3219 = vsyncadd (%p4152_p4), [#allocation11], 4294967024 }
 0x1ed   : > { %3221 = dma.done.wait (%p4152_p4), [#allocation14], 272  }
 0x1ee   : > { %3223 = vsyncadd (%p4152_p4), [#allocation14], 4294967024 }
 0x1ef   : > { %3225 = dma.done.wait (%p4152_p4), [#allocation17], 272  }
 0x1f0   : > { %3227 = vsyncadd (%p4152_p4), [#allocation17], 4294967024 }
 0x1f1   : > { %3229 = dma.done.wait (%p4152_p4), [#allocation20], 32  }
 0x1f2   : > { %3231 = vsyncadd (%p4152_p4), [#allocation20], 4294967264 }
 0x1f3   : > { %3233 = dma.done.wait (%p4152_p4), [#allocation23], 272  }
 0x1f4   : > { %3235 = vsyncadd (%p4152_p4), [#allocation23], 4294967024 }
 0x1f5   : > { %3237 = dma.done.wait (%p4152_p4), [#allocation26], 1040  }
 0x1f6   : > { %3239 = vsyncadd (%p4152_p4), [#allocation26], 4294966256 }
 0x1f7   : > { %3241 = dma.done.wait (%p4152_p4), [#allocation29], 32  }
 0x1f8   : > { %3243 = vsyncadd (%p4152_p4), [#allocation29], 4294967264  ;;  %v3291_v0 = vmov 0.0   ;;  %vm3292_vm0 = vmmov 0   ;;  %v2638_v1 = vld [vmem:[#allocation10] sm:$0xff]   ;;  %v2639_v2 = vld [vmem:[#allocation10 + $0x8] sm:$0xff]  }
 0x1f9   : > { %2284 = vmatprep.subr.bf16.mxu1 %v3291_v0  ;;  %2288 = vmatprep.mubr.msk.bf16.mxu1 %vm3292_vm0, %v3291_v0  ;;  %v3895_v3 = vld [vmem:[%s675_s19] sm:$0xff]  ;;  %vm820_vm1 = vcmask 261120   ;;  %v2640_v5 = vld [vmem:[#allocation13] sm:$0xff]   ;;  %v2191_v9 = vld [vmem:[#allocation12] ss:$0 sm:$0xff]  ;;  %vm928_vm2 = vcmask 257024  }
 0x1fa   : > { %2314 = vmatprep.subr.bf16.mxu0 %v3291_v0  ;;  %2316 = vmatprep.mubr.msk.bf16.mxu0 %vm3292_vm0, %v3291_v0  ;;  %v796_v4 = vpack.c.bf16 %v3895_v3, %v3895_v3  ;;  %v2641_v6 = vld [vmem:[#allocation13 + $0x8] sm:$0xff]   ;;  %v2642_v7 = vld [vmem:[#allocation7] sm:$0xff]   ;;  %v2195_v16 = vld [vmem:[#allocation15] ss:$0 sm:$0xff]  ;;  %vm1006_vm3 = vcmask 64512   ;;  %s3293_s5 = smov 120  }
 0x1fb   : > { %2285 = vmatpush3.bf16.msra.mxu1 %v2638_v1  ;;  %v2643_v8 = vld [vmem:[#allocation7 + $0x8] sm:$0xff]   ;;  %v2199_v26 = vld [vmem:[#allocation9] ss:$0 sm:$0xff]  ;;  %vm1067_vm4 = vcmask 1043456   ;;  %s3294_s26 = smov 112   ;;  %s3295_s20 = smov 104  }
 0x1fc   : > { %2286 = vmatprep.subr.bf16.mxu1 %v3291_v0  ;;  %v1114_v61 = vld [vmem:[#allocation16] sm:$0xf]  ;;  %s4153_s24 = sld [smem:[#allocation45_spill]]  ;;  %s789_s18 = scalar_lea.vmem [#allocation31], %s2173_s29 }
 0x1fd   : > { %s1917_s3 = sshll.u32 %s789_s18, 4  ;;  %s4154_s25 = sld [smem:[#allocation57_spill]]  ;;  %s4023_s3 = int_to_ptr.vmem [resolvable:$true] %s1917_s3 }
 0x1fe   : > { %p4156_p9 = scmp.ne.s32.totalorder %s4144_s1, 0  ;;  %s3296_s29 = smov [#allocation31]  }
 0x1ff   : > { %2287 = vmatpush3.bf16.msra.mxu1 %v2639_v2  ;;  %v1284_v2 = vsel %vm1067_vm4, %v1114_v61, 0 }
 0x200   : > { %2292 = vmatprep.subr.bf16.mxu1 %v3291_v0 }
 0x202   : > { %2289 = vmatmul.mubr.msk.bf16.vlgmr.msra.gmra.mrb[0].mxu1 %vm820_vm1, %v796_v4  ;;  %s2236_s17 = sshll.u32 %s4153_s24, 7 }
 0x203   : > { %2293 = vmatpush3.bf16.msra.mxu1 %v2640_v5  ;;  %2296 = vmatprep.mubr.msk.bf16.mxu1 %vm3292_vm0, %v3291_v0  ;;  %s4155_s19 = smov %s4154_s25  ;;  %s4021_s4 = scalar_lea.hbm %s4154_s25, %s2236_s17 }
 0x204   : > { %2294 = vmatprep.subr.bf16.mxu1 %v3291_v0 }
 0x207   : > { %2295 = vmatpush3.bf16.msra.mxu1 %v2641_v6 }
 0x208   : > { %2300 = vmatprep.subr.bf16.mxu1 %v3291_v0 }
 0x20a   : > { %2297 = vmatmul.mubr.msk.bf16.vlgmr.msra.gmra.mrb[4].mxu1 %vm820_vm1, %v796_v4 }
 0x20b   : > { %2301 = vmatpush3.bf16.msra.mxu1 %v2642_v7  ;;  %2304 = vmatprep.mubr.msk.bf16.mxu1 %vm3292_vm0, %v3291_v0 }
 0x20c   : > { %2302 = vmatprep.subr.bf16.mxu1 %v3291_v0 }
 0x20f   : > { %2303 = vmatpush3.bf16.msra.mxu1 %v2643_v8 }
 0x210   : > { %2308 = vmatprep.subr.bf16.mxu1 %v3291_v0 }
 0x212   : > { %2305 = vmatmul.mubr.msk.bf16.vlgmr.msra.gmra.mrb[8].mxu1 %vm820_vm1, %v796_v4  ;;  %v1233_v4 = vld [vmem:[#allocation16 + $0x4] sm:$0xf] }
 0x213   : > { %2310 = vmatprep.mubr.msk.bf16.mxu1 %vm3292_vm0, %v3291_v0  ;;  %v1238_v5 = vsel %vm1067_vm4, %v1233_v4, 0 }
 0x2d5   : > { %v858_v10 = vpop.f32.mrb[0].mxu1 }
 0x2d6   : > { %v859_v11 = vadd.f32 %v2191_v9, %v858_v10  ;;  %v2290_v12 = vpop.f32.mrb[1].mxu1 }
 0x2d7   : > { %v861_v13 = vpop.f32.mrb[2].mxu1 }
 0x2d8   : > { %v927_v14 = vpack.c.bf16 %v859_v11, %v859_v11  ;;  %v2291_v15 = vpop.f32.mrb[3].mxu1 }
 0x2da   : > { %929 = vst.msk [vmem:[#allocation2] sm:$0xf] %vm928_vm2, %v927_v14 }
 0x2dd   : > { %v921_v17 = vpop.f32.mrb[4].mxu1 }
 0x2de   : > { %v922_v18 = vadd.f32 %v2195_v16, %v921_v17  ;;  %v2298_v19 = vpop.f32.mrb[5].mxu1 }
 0x2df   : > { %v924_v20 = vpop.f32.mrb[6].mxu1 }
 0x2e0   : > { %v930_v21 = vpack.c.bf16 %v922_v18, %v922_v18  ;;  %v2299_v22 = vpop.f32.mrb[7].mxu1 }
 0x2e1   : > { %v1005_v23 = vld [vmem:[#allocation2] sm:$0xf] }
 0x2e2   : > { %931 = vst.msk [vmem:[#allocation3] sm:$0xf] %vm928_vm2, %v930_v21  ;;  %v1011_v24 = vsel %vm1006_vm3, %v1005_v23, 0  ;;  %v3915_v25 = vcombine.low %v1005_v23, %v1005_v23 }
 0x2e3   : > { %2309 = vmatpush3.bf16.xpose.msra.mxu1 %v1011_v24 }
 0x2e4   : > { %1121 = vrot.lane.b32.xlu0 %v3915_v25, %s3293_s5  ;;  %2320 = vmatprep.subr.bf16.mxu1 %v3291_v0 }
 0x2e5   : > { %v997_v27 = vpop.f32.mrb[8].mxu1 }
 0x2e6   : > { %v998_v28 = vadd.f32 %v2199_v26, %v997_v27  ;;  %v2306_v29 = vpop.f32.mrb[9].mxu1 }
 0x2e7   : > { %v1000_v30 = vpop.f32.mrb[10].mxu1 }
 0x2e8   : > { %v1003_v31 = vmul.f32 0.35355338, %v998_v28  ;;  %v2307_v32 = vpop.f32.mrb[11].mxu1 }
 0x2e9   : > { %v1063_v33 = vld [vmem:[#allocation3] sm:$0xf] }
 0x2ea   : > { %v1004_v34 = vpack.c.bf16 %v1003_v31, %v1003_v31  ;;  %v1069_v35 = vsel %vm1067_vm4, %v1063_v33, 0  ;;  %v3924_v36 = vcombine.low %v1063_v33, %v1063_v33 }
 0x2eb   : > { %2315 = vmatpush3.bf16.msra.mxu0 %v1069_v35 }
 0x2ec   : > { %1116 = vrot.lane.b32.xlu0 %v1004_v34, %s3293_s5  ;;  %2311 = vmatmul.mubr.msk.bf16.vlgmr.msra.gmra.mrb[12].mxu1 %vm1006_vm3, %v1004_v34 }
 0x2ed   : > { %2322 = vmatprep.mubr.msk.bf16.mxu1 %vm3292_vm0, %v3291_v0  ;;  %2326 = vmatprep.subr.bf16.mxu0 %v3291_v0 }
 0x2f0   : > { %1182 = vrot.lane.b32.xlu0 %v3924_v36, %s3293_s5  ;;  %s1903_s5 = scalar_lea.sflag [#allocation6], %s3847_s23 }
 0x2f4   : > { %1328 = vrot.lane.b32.xlu0 %v3915_v25, %s3294_s26 }
 0x356   : > { %v1122_v37 = vpop.permute.xlu0 %1121 }
 0x357   : > { %v1127_v38 = vsel %vm1006_vm3, %v1122_v37, 0 }
 0x358   : > { %2321 = vmatpush3.bf16.xpose.msra.mxu1 %v1127_v38 }
 0x359   : > { %2332 = vmatprep.subr.bf16.mxu1 %v3291_v0 }
 0x35e   : > { %v1117_v39 = vpop.permute.xlu0 %1116 }
 0x35f   : > { %2323 = vmatmul.mubr.msk.bf16.vlgmr.msra.gmra.mrb[16].mxu1 %vm1006_vm3, %v1117_v39 }
 0x360   : > { %2334 = vmatprep.mubr.msk.bf16.mxu1 %vm3292_vm0, %v3291_v0  ;;  %2333 = vmatpush3.bf16.msra.mxu1 %v1238_v5 }
 0x361   : > { %2344 = vmatprep.subr.bf16.mxu1 %v3291_v0 }
 0x362   : > { %v1183_v54 = vpop.permute.xlu0 %1182 }
 0x363   : > { %v1188_v57 = vsel %vm1067_vm4, %v1183_v54, 0 }
 0x366   : > { %v1329_v6 = vpop.permute.xlu0 %1328 }
 0x367   : > { %v1334_v26 = vsel %vm1006_vm3, %v1329_v6, 0 }
 0x3bf   : > { %v1047_v40 = vpop.f32.mrb[12].mxu1 }
 0x3c0   : > { %v2312_v41 = vpop.f32.mrb[13].mxu1  ;;  %v1053_v42 = vsel %vm1006_vm3, %v1047_v40, -inf }
 0x3c1   : > { %1054 = vmax.xlane.f32.xlu1 %v1053_v42  ;;  %v1050_v43 = vpop.f32.mrb[14].mxu1 }
 0x3c2   : > { %v2313_v44 = vpop.f32.mrb[15].mxu1 }
 0x432   : > { %v1163_v45 = vpop.f32.mrb[16].mxu1 }
 0x433   : > { %v2324_v46 = vpop.f32.mrb[17].mxu1  ;;  %v1169_v47 = vsel %vm1006_vm3, %v1163_v45, -inf }
 0x434   : > { %1170 = vmax.xlane.f32.xlu1 %v1169_v47  ;;  %v1166_v48 = vpop.f32.mrb[18].mxu1 }
 0x435   : > { %v2325_v49 = vpop.f32.mrb[19].mxu1 }
 0x44e   : > { %v1055_v50 = vpop.xlane.xlu1 %1054 }
 0x44f   : > { %v1056_v51 = vsub.f32 %v1047_v40, %v1055_v50 }
 0x451   : > { %v1057_v52 = vmul.f32 1.442695, %v1056_v51  ;;  %v1437_v51 = vld [vmem:[#allocation16 + $0x8] sm:$0xf] }
 0x453   : > { %2656 = vpow2.f32 %v1057_v52  ;;  %v1442_v52 = vsel %vm1067_vm4, %v1437_v51, 0 }
 0x45d   : > { %v2657_v53 = vpop.eup %2656 }
 0x45e   : > { %v1059_v55 = vsel %vm1006_vm3, %v2657_v53, 0.0  ;;  %v1062_v56 = vpack.c.bf16 %v2657_v53, %v2657_v53 }
 0x45f   : > { %1060 = vadd.xlane.f32.xlu0 %v1059_v55 }
 0x460   : > { %2317 = vmatmul.mubr.msk.bf16.vlgmr.msra.gmra.mrb[0].mxu0 %vm1006_vm3, %v1062_v56 }
 0x461   : > { %2327 = vmatpush3.bf16.msra.mxu0 %v1188_v57  ;;  %2328 = vmatprep.mubr.msk.bf16.mxu0 %vm3292_vm0, %v3291_v0 }
 0x462   : > { %2338 = vmatprep.subr.bf16.mxu0 %v3291_v0 }
 0x475   : > { %1386 = vrot.lane.b32.xlu0 %v3924_v36, %s3294_s26 }
 0x479   : > { %1485 = vrot.lane.b32.xlu0 %v1004_v34, %s3295_s20 }
 0x4c1   : > { %v1171_v58 = vpop.xlane.xlu1 %1170 }
 0x4c2   : > { %v1172_v59 = vsub.f32 %v1163_v45, %v1171_v58 }
 0x4c4   : > { %v1173_v60 = vmul.f32 1.442695, %v1172_v59 }
 0x4c6   : > { %2658 = vpow2.f32 %v1173_v60 }
 0x4d0   : > { %v2659_v62 = vpop.eup %2658 }
 0x4d1   : > { %v1175_v63 = vsel %vm1006_vm3, %v2659_v62, 0.0  ;;  %v1178_v1 = vpack.c.bf16 %v2659_v62, %v2659_v62 }
 0x4d2   : > { %1176 = vadd.xlane.f32.xlu1 %v1175_v63 }
 0x4d3   : > { %2329 = vmatmul.mubr.msk.bf16.vlgmr.msra.gmra.mrb[4].mxu0 %vm1006_vm3, %v1178_v1 }
 0x4d4   : > { %2339 = vmatpush3.bf16.msra.mxu0 %v1284_v2  ;;  %2340 = vmatprep.mubr.msk.bf16.mxu0 %vm3292_vm0, %v3291_v0 }
 0x4d5   : > { %2350 = vmatprep.subr.bf16.mxu0 %v3291_v0 }
 0x4e3   : > { %1326 = vrot.lane.b32.xlu1 %v1004_v34, %s3294_s26  ;;  %s3156_s26 = scalar_lea.vmem %s4023_s3, 128 }
 0x4e4   : > { %p3157_p2 = scmp.ne.s32.totalorder %s4023_s3, %s3156_s26 }
 0x4e6   : > { %p3158_p10 = pnand %p3157_p2, %p4156_p9 }
 0x4e8   : > { %p3159_p1 = pneg %p3158_p10 }
 0x4ec   : > { %v1061_v7 = vpop.xlane.xlu0 %1060 }
 0x4ed   : > { %2660 = vrcp.f32 %v1061_v7 }
 0x4f0   : > { %v1387_v12 = vpop.permute.xlu0 %1386 }
 0x4f1   : > { %v1392_v16 = vsel %vm1067_vm4, %v1387_v12, 0 }
 0x4f7   : > { %v2661_v8 = vpop.eup %2660 }
 0x533   : > { %v1105_v9 = vpop.f32.mrb[0].mxu0 }
 0x534   : > { %v1112_v10 = vmul.f32 %v2661_v8, %v1105_v9  ;;  %v2318_v11 = vpop.f32.mrb[1].mxu0 }
 0x535   : > { %v1108_v13 = vpop.f32.mrb[2].mxu0  ;;  %v1596_v11 = vld [vmem:[#allocation16 + $0xc] sm:$0xf] }
 0x536   : > { %v1113_v14 = vpack.c.bf16 %v1112_v10, %v1112_v10  ;;  %v2319_v15 = vpop.f32.mrb[3].mxu0  ;;  %v1601_v12 = vsel %vm1067_vm4, %v1596_v11, 0 }
 0x538   : > { %2341 = vmatmul.mubr.msk.bf16.vlgmr.msra.gmra.mrb[8].mxu0 %vm1006_vm3, %v1113_v14 }
 0x539   : > { %2351 = vmatpush3.bf16.msra.mxu0 %v1392_v16  ;;  %2352 = vmatprep.mubr.msk.bf16.mxu0 %vm3292_vm0, %v3291_v0 }
 0x53a   : > { %2362 = vmatprep.subr.bf16.mxu0 %v3291_v0 }
 0x55f   : > { %v1177_v17 = vpop.xlane.xlu1 %1176 }
 0x560   : > { %2662 = vrcp.f32 %v1177_v17 }
 0x563   : > { %v1327_v27 = vpop.permute.xlu1 %1326 }
 0x56a   : > { %v2663_v18 = vpop.eup %2662 }
 0x5a6   : > { %v1224_v19 = vpop.f32.mrb[4].mxu0 }
 0x5a7   : > { %v1231_v20 = vmul.f32 %v2663_v18, %v1224_v19  ;;  %v2330_v21 = vpop.f32.mrb[5].mxu0 }
 0x5a8   : > { %v1227_v22 = vpop.f32.mrb[6].mxu0 }
 0x5a9   : > { %v1232_v23 = vpack.c.bf16 %v1231_v20, %v1231_v20  ;;  %v2331_v24 = vpop.f32.mrb[7].mxu0 }
 0x5ab   : > { %2335 = vmatmul.mubr.msk.bf16.vlgmr.msra.gmra.mrb[20].mxu1 %vm1006_vm3, %v1232_v23 }
 0x5ac   : > { %2345 = vmatpush3.bf16.xpose.msra.mxu1 %v1334_v26  ;;  %2346 = vmatprep.mubr.msk.bf16.mxu1 %vm3292_vm0, %v3291_v0 }
 0x5ad   : > { %2356 = vmatprep.subr.bf16.mxu1 %v3291_v0 }
 0x5b3   : > { %2347 = vmatmul.mubr.msk.bf16.vlgmr.msra.gmra.mrb[24].mxu1 %vm1006_vm3, %v1327_v27 }
 0x5b4   : > { %2358 = vmatprep.mubr.msk.bf16.mxu1 %vm3292_vm0, %v3291_v0  ;;  %2357 = vmatpush3.bf16.msra.mxu1 %v1442_v52 }
 0x5b5   : > { %2368 = vmatprep.subr.bf16.mxu1 %v3291_v0 }
 0x60b   : > { %v1320_v28 = vpop.f32.mrb[8].mxu0 }
 0x60c   : > { %v2342_v29 = vpop.f32.mrb[9].mxu0 }
 0x60d   : > { %v1323_v30 = vpop.f32.mrb[10].mxu0 }
 0x60e   : > { %v2343_v31 = vpop.f32.mrb[11].mxu0 }
 0x67e   : > { %v1274_v32 = vpop.f32.mrb[20].mxu1 }
 0x67f   : > { %v3967_v33 = vadd.f32 %v1320_v28, %v1274_v32  ;;  %v2336_v34 = vpop.f32.mrb[21].mxu1  ;;  %v2217_v28 = vld [vmem:[#allocation18] ss:$0 sm:$0xff] }
 0x680   : > { %v1277_v35 = vpop.f32.mrb[22].mxu1 }
 0x681   : > { %v2337_v37 = vpop.f32.mrb[23].mxu1 }
 0x686   : > { %v1370_v38 = vpop.f32.mrb[24].mxu1 }
 0x687   : > { %v2348_v39 = vpop.f32.mrb[25].mxu1  ;;  %v1376_v40 = vsel %vm1006_vm3, %v1370_v38, -inf }
 0x688   : > { %1377 = vmax.xlane.f32.xlu1 %v1376_v40  ;;  %v1373_v41 = vpop.f32.mrb[26].mxu1 }
 0x689   : > { %v2349_v42 = vpop.f32.mrb[27].mxu1 }
 0x68a   : > { %v2646_v42 = vld [vmem:[#allocation22] sm:$0xff]  }
 0x699   : > { %1487 = vrot.lane.b32.xlu1 %v3915_v25, %s3295_s20  ;;  %v1486_v25 = vpop.permute.xlu0 %1485 }
 0x715   : > { %v1378_v43 = vpop.xlane.xlu1 %1377 }
 0x716   : > { %v1379_v44 = vsub.f32 %v1370_v38, %v1378_v43  ;;  %v2647_v43 = vld [vmem:[#allocation22 + $0x8] sm:$0xff]  }
 0x718   : > { %v1380_v45 = vmul.f32 1.442695, %v1379_v44  ;;  %v2648_v44 = vld [vmem:[#allocation25] sm:$0xff]  }
 0x719   : > { %v1488_v47 = vpop.permute.xlu1 %1487 }
 0x71a   : > { %2664 = vpow2.f32 %v1380_v45  ;;  %v1493_v50 = vsel %vm1006_vm3, %v1488_v47, 0 }
 0x724   : > { %v2665_v46 = vpop.eup %2664 }
 0x725   : > { %v1382_v48 = vsel %vm1006_vm3, %v2665_v46, 0.0  ;;  %v1385_v49 = vpack.c.bf16 %v2665_v46, %v2665_v46 }
 0x726   : > { %1383 = vadd.xlane.f32.xlu0 %v1382_v48  ;;  %v2218_v48 = vld [vmem:[#allocation19] ss:$0 sm:$0xff] }
 0x727   : > { %2353 = vmatmul.mubr.msk.bf16.vlgmr.msra.gmra.mrb[12].mxu0 %vm1006_vm3, %v1385_v49 }
 0x728   : > { %2363 = vmatpush3.bf16.xpose.msra.mxu0 %v1493_v50  ;;  %2364 = vmatprep.mubr.msk.bf16.mxu0 %vm3292_vm0, %v3291_v0  ;;  %v2219_v50 = vld [vmem:[#allocation21] ss:$0 sm:$0xff] }
 0x729   : > { %2374 = vmatprep.subr.bf16.mxu0 %v3291_v0 }
 0x72f   : > { %2365 = vmatmul.mubr.msk.bf16.vlgmr.msra.gmra.mrb[16].mxu0 %vm1006_vm3, %v1486_v25 }
 0x730   : > { %2376 = vmatprep.mubr.msk.bf16.mxu0 %vm3292_vm0, %v3291_v0  ;;  %2375 = vmatpush3.bf16.msra.mxu0 %v1601_v12 }
 0x731   : > { %2388 = vmatprep.subr.bf16.mxu0 %v3291_v0 }
 0x73c   : > { %1545 = vrot.lane.b32.xlu0 %v3924_v36, %s3295_s20  ;;  %s3160_s20 = sshll.u32 %s3296_s29, 4  ;;  %s3161_s20 = int_to_ptr.vmem [resolvable:$false] %s3160_s20 }
 0x73d   : > { %s3162_s24 = scalar_lea.vmem %s3161_s20, 256  ;;  %p3163_p0 = scmp.lt.s32.totalorder %s4023_s3, %s3161_s20 }
 0x73e   : > { %p3164_p7 = scmp.lt.s32.totalorder %s3162_s24, %s3156_s26 }
 0x740   : > { %p3165_p5 = por %p3164_p7, %p3163_p0 }
 0x742   : > { %p3166_p8 = pnand %p3165_p5, %p3159_p1 }
 0x7b3   : > { %v1384_v53 = vpop.xlane.xlu0 %1383 }
 0x7b4   : > { %2666 = vrcp.f32 %v1384_v53  ;;  %v2649_v53 = vld [vmem:[#allocation25 + $0x8] sm:$0xff]  }
 0x7b7   : > { %v1546_v58 = vpop.permute.xlu0 %1545 }
 0x7b8   : > { %v1551_v62 = vsel %vm1067_vm4, %v1546_v58, 0  ;;  %v2654_v58 = vld [vmem:[#allocation25 + $0x30] sm:$0xff]  }
 0x7be   : > { %v2667_v54 = vpop.eup %2666 }
 0x7fa   : > { %v1428_v55 = vpop.f32.mrb[12].mxu0 }
 0x7fb   : > { %v1435_v56 = vmul.f32 %v2667_v54, %v1428_v55  ;;  %v2354_v57 = vpop.f32.mrb[13].mxu0  ;;  %v2650_v54 = vld [vmem:[#allocation25 + $0x10] sm:$0xff]   ;;  %v2651_v55 = vld [vmem:[#allocation25 + $0x18] sm:$0xff]  }
 0x7fc   : > { %v1431_v59 = vpop.f32.mrb[14].mxu0  ;;  %v2653_v57 = vld [vmem:[#allocation25 + $0x28] sm:$0xff]  }
 0x7fd   : > { %v1436_v60 = vpack.c.bf16 %v1435_v56, %v1435_v56  ;;  %v2355_v61 = vpop.f32.mrb[15].mxu0  ;;  %v2652_v56 = vld [vmem:[#allocation25 + $0x20] sm:$0xff]   ;;  %v2655_v59 = vld [vmem:[#allocation25 + $0x38] sm:$0xff]  }
 0x7ff   : > { %2359 = vmatmul.mubr.msk.bf16.vlgmr.msra.gmra.mrb[28].mxu1 %vm1006_vm3, %v1436_v60  ;;  %v2220_v60 = vld [vmem:[#allocation24] ss:$0 sm:$0xff] }
 0x800   : > { %2369 = vmatpush3.bf16.msra.mxu1 %v1551_v62  ;;  %2370 = vmatprep.mubr.msk.bf16.mxu1 %vm3292_vm0, %v3291_v0 }
 0x801   : > { %2380 = vmatprep.subr.bf16.mxu1 %v3291_v0 }
 0x802   : > { %v1529_v36 = vpop.f32.mrb[16].mxu0 }
 0x803   : > { %v2366_v63 = vpop.f32.mrb[17].mxu0  ;;  %v1535_v1 = vsel %vm1006_vm3, %v1529_v36, -inf }
 0x804   : > { %1536 = vmax.xlane.f32.xlu1 %v1535_v1  ;;  %v1532_v2 = vpop.f32.mrb[18].mxu0 }
 0x805   : > { %v2367_v4 = vpop.f32.mrb[19].mxu0 }
 0x891   : > { %v1537_v5 = vpop.xlane.xlu1 %1536 }
 0x892   : > { %v1538_v6 = vsub.f32 %v1529_v36, %v1537_v5 }
 0x894   : > { %v1539_v7 = vmul.f32 1.442695, %v1538_v6 }
 0x896   : > { %2668 = vpow2.f32 %v1539_v7 }
 0x8a0   : > { %v2669_v8 = vpop.eup %2668 }
 0x8a1   : > { %v1541_v9 = vsel %vm1006_vm3, %v2669_v8, 0.0  ;;  %v1544_v10 = vpack.c.bf16 %v2669_v8, %v2669_v8 }
 0x8a2   : > { %1542 = vadd.xlane.f32.xlu1 %v1541_v9 }
 0x8a3   : > { %2371 = vmatmul.mubr.msk.bf16.vlgmr.msra.gmra.mrb[32].mxu1 %vm1006_vm3, %v1544_v10 }
 0x8a4   : > { %2384 = vmatprep.mubr.msk.bf16.mxu1 %vm3292_vm0, %v3291_v0  ;;  %2381 = vmatpush3.bf16.msra.mxu1 %v2646_v42 }
 0x8a5   : > { %2382 = vmatprep.subr.bf16.mxu1 %v3291_v0 }
 0x8a8   : > { %2383 = vmatpush3.bf16.msra.mxu1 %v2647_v43 }
 0x8d2   : > { %v1478_v13 = vpop.f32.mrb[28].mxu1 }
 0x8d3   : > { %v1484_v14 = vadd.f32 %v1478_v13, %v3967_v33  ;;  %v2360_v15 = vpop.f32.mrb[29].mxu1 }
 0x8d4   : > { %v1481_v16 = vpop.f32.mrb[30].mxu1 }
 0x8d5   : > { %v2361_v17 = vpop.f32.mrb[31].mxu1 }
 0x92f   : > { %v1543_v18 = vpop.xlane.xlu1 %1542 }
 0x930   : > { %2670 = vrcp.f32 %v1543_v18 }
 0x93a   : > { %v2671_v19 = vpop.eup %2670 }
 0x976   : > { %v1587_v20 = vpop.f32.mrb[32].mxu1 }
 0x977   : > { %v1594_v21 = vmul.f32 %v2671_v19, %v1587_v20  ;;  %v2372_v22 = vpop.f32.mrb[33].mxu1 }
 0x978   : > { %v1590_v23 = vpop.f32.mrb[34].mxu1 }
 0x979   : > { %v1595_v24 = vpack.c.bf16 %v1594_v21, %v1594_v21  ;;  %v2373_v26 = vpop.f32.mrb[35].mxu1 }
 0x97b   : > { %2377 = vmatmul.mubr.msk.bf16.vlgmr.msra.gmra.mrb[20].mxu0 %vm1006_vm3, %v1595_v24 }
 0x97c   : > { %2404 = vmatprep.mubr.msk.bf16.mxu0 %vm3292_vm0, %v3291_v0  ;;  %2389 = vmatpush3.bf16.msra.mxu0 %v2648_v44 }
 0x97d   : > { %2390 = vmatprep.subr.bf16.mxu0 %v3291_v0 }
 0x980   : > { %2391 = vmatpush3.bf16.msra.mxu0 %v2649_v53 }
 0x981   : > { %2392 = vmatprep.subr.bf16.mxu0 %v3291_v0 }
 0x984   : > { %2393 = vmatpush3.bf16.msra.mxu0 %v2650_v54 }
 0x985   : > { %2394 = vmatprep.subr.bf16.mxu0 %v3291_v0 }
 0x988   : > { %2395 = vmatpush3.bf16.msra.mxu0 %v2651_v55 }
 0x989   : > { %2396 = vmatprep.subr.bf16.mxu0 %v3291_v0 }
 0x98c   : > { %2397 = vmatpush3.bf16.msra.mxu0 %v2652_v56 }
 0x98d   : > { %2398 = vmatprep.subr.bf16.mxu0 %v3291_v0 }
 0x990   : > { %2399 = vmatpush3.bf16.msra.mxu0 %v2653_v57 }
 0x991   : > { %2400 = vmatprep.subr.bf16.mxu0 %v3291_v0 }
 0x994   : > { %2401 = vmatpush3.bf16.msra.mxu0 %v2654_v58 }
 0x995   : > { %2402 = vmatprep.subr.bf16.mxu0 %v3291_v0  ;;  %v2224_v0 = vld [vmem:[#allocation27] ss:$0 sm:$0xff] }
 0x998   : > { %2403 = vmatpush3.bf16.msra.mxu0 %v2655_v59 }
 0xa4e   : > { %v1637_v27 = vpop.f32.mrb[20].mxu0 }
 0xa4f   : > { %v1643_v29 = vadd.f32 %v1637_v27, %v1484_v14  ;;  %v2378_v30 = vpop.f32.mrb[21].mxu0 }
 0xa50   : > { %v1640_v31 = vpop.f32.mrb[22].mxu0  ;;  %v2233_v30 = vld [vmem:[#allocation28] ss:$0 sm:$0xff] }
 0xa51   : > { %v1651_v32 = vadd.f32 %v2217_v28, %v1643_v29  ;;  %v2379_v33 = vpop.f32.mrb[23].mxu0 }
 0xa53   : > { %v1652_v34 = vadd.f32 %v1651_v32, %v3895_v3  ;;  %v2234_v32 = vld [vmem:[#allocation30] ss:$0 sm:$0xff] }
 0xa55   : > { %v1655_v35 = vsel %vm820_vm1, %v1652_v34, 0.0 }
 0xa56   : > { %1656 = vadd.xlane.f32.xlu1 %v1655_v35 }
 0xae3   : > { %v1657_v37 = vpop.xlane.xlu1 %1656 }
 0xae4   : > { %v1659_v38 = vmul.f32 0.03125, %v1657_v37 }
 0xae6   : > { %v1660_v39 = vsub.f32 %v1652_v34, %v1659_v38 }
 0xae8   : > { %v1661_v40 = vmul.f32 %v1660_v39, %v1660_v39 }
 0xaea   : > { %v1662_v41 = vsel %vm820_vm1, %v1661_v40, 0.0 }
 0xaeb   : > { %1663 = vadd.xlane.f32.xlu0 %v1662_v41 }
 0xb78   : > { %v1664_v3 = vpop.xlane.xlu0 %1663 }
 0xb79   : > { %v1665_v45 = vmul.f32 0.03125, %v1664_v3 }
 0xb7b   : > { %v1666_v46 = vadd.f32 1e-05, %v1665_v45 }
 0xb7d   : > { %2672 = vrsqrt.f32 %v1666_v46 }
 0xb87   : > { %v2673_v47 = vpop.eup %2672 }
 0xb88   : > { %v1668_v49 = vmul.f32 %v2673_v47, %v1660_v39 }
 0xb8a   : > { %v1675_v25 = vmul.f32 %v2218_v48, %v1668_v49 }
 0xb8c   : > { %v1682_v51 = vadd.f32 %v2219_v50, %v1675_v25 }
 0xb8e   : > { %v1683_v52 = vpack.c.bf16 %v1682_v51, %v1682_v51 }
 0xb90   : > { %2385 = vmatmul.mubr.msk.bf16.vlgmr.msra.gmra.mrb[36].mxu1 %vm820_vm1, %v1683_v52 }
 0xc63   : > { %v1744_v61 = vpop.f32.mrb[36].mxu1 }
 0xc64   : > { %v1745_v62 = vadd.f32 %v2220_v60, %v1744_v61  ;;  %v2386_v36 = vpop.f32.mrb[37].mxu1 }
 0xc65   : > { %v1747_v63 = vpop.f32.mrb[38].mxu1 }
 0xc66   : > { %v1751_v1 = vmul.f32 %v1745_v62, %v1745_v62  ;;  %v2387_v2 = vpop.f32.mrb[39].mxu1  ;;  %v1750_v9 = vmul.f32 0.5, %v1745_v62 }
 0xc68   : > { %v1752_v4 = vmul.f32 %v1751_v1, %v1745_v62 }
 0xc6a   : > { %v1753_v5 = vmul.f32 0.044715, %v1752_v4 }
 0xc6c   : > { %v1754_v6 = vadd.f32 %v1753_v5, %v1745_v62 }
 0xc6e   : > { %v1755_v7 = vmul.f32 0.7978846, %v1754_v6 }
 0xc70   : > { %2674 = vtanh.f32 %v1755_v7 }
 0xc7a   : > { %v2675_v8 = vpop.eup %2674 }
 0xc7b   : > { %v1757_v10 = vadd.f32 1.0, %v2675_v8 }
 0xc7d   : > { %v1758_v11 = vmul.f32 %v1757_v10, %v1750_v9 }
 0xc7f   : > { %v1759_v12 = vpack.c.bf16 %v1758_v11, %v1758_v11 }
 0xc81   : > { %2405 = vmatmul.mubr.bf16.vlgmr.msra.gmra.mrb[24].mxu0 %v1759_v12 }
 0xd54   : > { %v1865_v13 = vpop.f32.mrb[24].mxu0 }
 0xd55   : > { %v1866_v14 = vadd.f32 %v2224_v0, %v1865_v13  ;;  %v2406_v15 = vpop.f32.mrb[25].mxu0 }
 0xd56   : > { %v1868_v16 = vpop.f32.mrb[26].mxu0 }
 0xd57   : > { %v2407_v17 = vpop.f32.mrb[27].mxu0  ;;  %v1871_v18 = vadd.f32 %v1866_v14, %v1682_v51 }
 0xd59   : > { %v1874_v19 = vsel %vm820_vm1, %v1871_v18, 0.0 }
 0xd5a   : > { %1875 = vadd.xlane.f32.xlu1 %v1874_v19 }
 0xde7   : > { %v1876_v20 = vpop.xlane.xlu1 %1875 }
 0xde8   : > { %v1877_v21 = vmul.f32 0.03125, %v1876_v20 }
 0xdea   : > { %v1878_v22 = vsub.f32 %v1871_v18, %v1877_v21 }
 0xdec   : > { %v1879_v23 = vmul.f32 %v1878_v22, %v1878_v22 }
 0xdee   : > { %v1880_v24 = vsel %vm820_vm1, %v1879_v23, 0.0 }
 0xdef   : > { %1881 = vadd.xlane.f32.xlu1 %v1880_v24 }
 0xe7c   : > { %v1882_v26 = vpop.xlane.xlu1 %1881 }
 0xe7d   : > { %v1883_v27 = vmul.f32 0.03125, %v1882_v26 }
 0xe7f   : > { %v1884_v28 = vadd.f32 1e-05, %v1883_v27 }
 0xe81   : > { %2676 = vrsqrt.f32 %v1884_v28 }
 0xe8b   : > { %v2677_v29 = vpop.eup %2676 }
 0xe8c   : > { %v1886_v31 = vmul.f32 %v2677_v29, %v1878_v22 }
 0xe8e   : > { %v1893_v33 = vmul.f32 %v2233_v30, %v1886_v31 }
 0xe90   : > { %v1900_v34 = vadd.f32 %v2234_v32, %v1893_v33 }
 0xe92   : > { %1901 = vst.msk [vmem:[%s789_s18] sm:$0xff] %vm820_vm1, %v1900_v34 }
 0xe93   : > { %3169 = shalt.err (!%p3166_p8)
}
 0xe94   : > { %s3170_s23 = scalar_lea.hbm %s4021_s4, 128  ;;  %s3174_s28 = scalar_lea.hbm %s4155_s19, 256 }
 0xe95   : > { %p3171_p3 = scmp.ne.s32.totalorder %s4021_s4, %s3170_s23  ;;  %p3175_p13 = scmp.lt.u32.totalorder %s4021_s4, %s4155_s19 }
 0xe96   : > { %p3176_p12 = scmp.lt.u32.totalorder %s3174_s28, %s3170_s23  ;;  %p3178_p2 = scmp.lt.u32.totalorder %s3170_s23, %s4021_s4 }
 0xe97   : > { %p3172_p11 = pnand %p3171_p3, %p4156_p9 }
 0xe98   : > { %p3177_p4 = por %p3176_p12, %p3175_p13 }
 0xe99   : > { %p3173_p6 = pneg %p3172_p11 }
 0xe9a   : > { %p3179_p10 = por %p3178_p2, %p3177_p4 }
 0xe9c   : > { %p3180_p1 = pnand %p3179_p10, %p3173_p6 }
 0xe9e   : > { %3183 = shalt.err (!%p3180_p1)
}
 0xe9f   : > { %2474 = dma.vmem_to_hbm [thread:$0]  (%p4156_p9), %s4023_s3, 128, %s4021_s4, %s1903_s5  }
 0xea0 PF: > { %s4157_s26 = sld [smem:[#allocation42_spill]]  ;;  %s4158_s29 = sld [smem:[#allocation47_spill]] }
 0xea1   : > { %p4159_p0 = scmp.ne.s32.totalorder %s4145_s22, 0 }
 0xea6   : > { %s1929_s20 = sand.u32 1, %s4157_s26   ;;  %p4160_p7 = scmp.ge.s32.totalorder %s4158_s29, 2 }
 0xea7   : > { %s1930_s24 = scalar_lea.sflag [#allocation6], %s1929_s20 }
 0xea8   : > { %p2530_p5 = pnand %p4160_p7, %p4159_p0 }
 0xeaa   : > { %3245 = dma.done.wait (!%p2530_p5), %s1930_s24, 128  }
 0xeab   : > { %3247 = vsyncadd (!%p2530_p5), %s1930_s24, 4294967168  ;;  %s41_s29 = sadd.s32 1, %s4158_s29   ;;  %s4161_s24 = sld [smem:[#allocation43_spill]] }
 0xeac   : > { %p38_p8 = scmp.ge.s32.totalorder %s41_s29, 4   ;;  %s4162_s25 = sld [smem:[#allocation44_spill]] }
 0xead   : > { %s4163_s1 = sld [smem:[#allocation46_spill]]  ;;  %s4164_s23 = smov %s4169_s27 }
 0xeae   : > { %s4165_s26 = smov %s3797_s0  ;;  %s4167_s28 = smov %s4164_s23 }
 0xeaf   :  { %40 = sbr.rel (!%p38_p8) target bundleno = 23 (0x17), region = 202 }
 0xeb3   : > { %s4166_s27 = smov %s4163_s1 }
 0xeb6   :  { %1935 = vsyncpa [#allocation5], 1 }
 0xeb7   :  { %1937 = vsyncpa [#allocation5 + $0x1], 1 }
 0xeb8   :  { %1938 = vsyncpa [#allocation8], 1 }
 0xeb9   :  { %1939 = vsyncpa [#allocation11], 1 }
 0xeba   :  { %1940 = vsyncpa [#allocation14], 1 }
 0xebb   :  { %1941 = vsyncpa [#allocation17], 1 }
 0xebc   :  { %1942 = vsyncpa [#allocation20], 1 }
 0xebd   :  { %1943 = vsyncpa [#allocation23], 1 }
 0xebe   :  { %1944 = vsyncpa [#allocation26], 1 }
 0xebf   :  { %1945 = vsyncpa [#allocation29], 1 }
 0xec0   :  { %1946 = vsyncpa [#allocation6], 1 }
 0xec1   :  { %1948 = vsyncpa [#allocation6 + $0x1], 1 }

</bundles_post_ra>
